<compile_context>
chip_gen: v7x
topology: tpu7x:2x2x1
jax: 0.10.0
libtpu: 0.0.40
codegen_flags: <defaults>
</compile_context>

<pallas_src>
import functools

import jax
import jax.numpy as jnp
from jax.experimental import pallas as pl
from jax.experimental.pallas import tpu as pltpu

BN_EPS = 1e-5
LANE = 128


def _round_up(n, m):
    return (n + m - 1) // m * m


def _default_vmem_limit_bytes():
    """Generation-aware scoped-VMEM limit: ~80% of physical per-core VMEM."""
    try:
        cap = getattr(pltpu.get_tpu_info(), "vmem_capacity_bytes", None)
        if cap:
            return int(cap * 0.8)
    except Exception:
        pass
    return 64 * 1024 * 1024


def _pick_block_rows(B, in_f, hid_p, out_p, out_itemsize, vmem_budget):
    """Largest batch tile whose pipeline buffers fit the VMEM budget."""
    # Costs independent of block_rows: resident weights/affine (worst case
    # double-buffered), full-batch h (bf16) / y (f32) scratch, small stats.
    fixed = 2 * ((in_f * hid_p + hid_p * out_p) * 2 + (hid_p + out_p) * 2 * 4)
    fixed += B * hid_p * 2 + B * out_p * 4
    fixed += (hid_p + out_p) * 4 * 4
    # Multiples of 16 only, so bf16 h_buf row slices stay sublane-tile aligned.
    cands = [c for c in (1024, 512, 256, 128, 64, 32, 16) if B % c == 0]
    if not cands:
        return B
    for cand in cands:
        per_tile = 2 * cand * in_f * 2            # x bf16 double buffer
        per_tile += 2 * cand * out_p * out_itemsize   # out double buffer
        if fixed + per_tile <= int(vmem_budget * 0.9):
            return cand
    return cands[-1]


def _projection_head_kernel(x_ref, w1_ref, g1_ref, b1_ref,
                            w2_ref, g2_ref, b2_ref,
                            o_ref,
                            h_buf, y_buf, sum1, ssq1, sum2, ssq2,
                            s1, t1, s2, t2,
                            *, block_rows, inv_batch):
    p = pl.program_id(0)   # phase: 0 = x@W1, 1 = BN1+ReLU+@W2, 2 = BN2+store
    i = pl.program_id(1)   # batch tile
    row0 = pl.multiple_of(i * block_rows, block_rows)

    @pl.when((p == 0) & (i == 0))
    def _init():
        sum1[...] = jnp.zeros_like(sum1)
        ssq1[...] = jnp.zeros_like(ssq1)
        sum2[...] = jnp.zeros_like(sum2)
        ssq2[...] = jnp.zeros_like(ssq2)

    @pl.when(p == 0)
    def _phase0():
        # Layer 1 matmul on the MXU: bf16 operands (x pre-cast in wrapper),
        # f32 accumulation.
        h = jnp.dot(x_ref[...], w1_ref[...], preferred_element_type=jnp.float32)
        # Full-batch single-pass moments from the f32 result.
        sum1[...] += jnp.sum(h, axis=0, keepdims=True)
        ssq1[...] += jnp.sum(h * h, axis=0, keepdims=True)
        # Store pre-BN activations (bf16 scratch halves VMEM).
        h_buf[pl.ds(row0, block_rows), :] = h.astype(h_buf.dtype)

    @pl.when(p == 1)
    def _phase1():
        @pl.when(i == 0)
        def _fold_bn1():   # fold BN1 once per phase, reuse across tiles
            mean = sum1[...] * inv_batch
            var = jnp.maximum(ssq1[...] * inv_batch - mean * mean, 0.0)
            s = g1_ref[...] * jax.lax.rsqrt(var + BN_EPS)   # rsqrt -> EUP slot
            s1[...] = s
            t1[...] = b1_ref[...] - mean * s

        h = h_buf[pl.ds(row0, block_rows), :].astype(jnp.float32)
        h = jnp.maximum(h * s1[...] + t1[...], 0.0)         # BN1 + ReLU, one VPU pass
        y = jnp.dot(h.astype(jnp.bfloat16), w2_ref[...],
                    preferred_element_type=jnp.float32)
        sum2[...] += jnp.sum(y, axis=0, keepdims=True)
        ssq2[...] += jnp.sum(y * y, axis=0, keepdims=True)
        y_buf[pl.ds(row0, block_rows), :] = y

    @pl.when(p == 2)
    def _phase2():
        @pl.when(i == 0)
        def _fold_bn2():
            mean = sum2[...] * inv_batch
            var = jnp.maximum(ssq2[...] * inv_batch - mean * mean, 0.0)
            s = g2_ref[...] * jax.lax.rsqrt(var + BN_EPS)
            s2[...] = s
            t2[...] = b2_ref[...] - mean * s

        y = y_buf[pl.ds(row0, block_rows), :]
        o_ref[...] = (y * s2[...] + t2[...]).astype(o_ref.dtype)   # lane-dense store


def projection_head(x, w1, g1, b1, w2, g2, b2, *, block_rows=None,
                    out_dtype=jnp.float32, vmem_limit_bytes=None):
    """x: (B, in_f) f32; w1: (in_f, hid); w2: (hid, out); g*/b*: (1, feat)."""
    B, in_f = x.shape
    hid_f = w1.shape[1]
    out_f = w2.shape[1]
    hid_p = _round_up(hid_f, LANE)
    out_p = _round_up(out_f, LANE)

    if vmem_limit_bytes is None:
        vmem_limit_bytes = _default_vmem_limit_bytes()

    # bf16 input stream + lane-dense zero padding of the feature dims.
    # Zero-padded weight columns plus gamma=beta=0 keep every padded feature
    # exactly 0 through both BN layers, so slicing the padded output is exact.
    xb = x.astype(jnp.bfloat16)
    w1p = jnp.pad(w1, ((0, 0), (0, hid_p - hid_f))).astype(jnp.bfloat16)
    g1p = jnp.pad(g1, ((0, 0), (0, hid_p - hid_f)))
    b1p = jnp.pad(b1, ((0, 0), (0, hid_p - hid_f)))
    w2p = jnp.pad(w2, ((0, hid_p - hid_f), (0, out_p - out_f))).astype(jnp.bfloat16)
    g2p = jnp.pad(g2, ((0, 0), (0, out_p - out_f)))
    b2p = jnp.pad(b2, ((0, 0), (0, out_p - out_f)))

    if block_rows is None:
        block_rows = _pick_block_rows(B, in_f, hid_p, out_p,
                                      jnp.dtype(out_dtype).itemsize,
                                      vmem_limit_bytes)
    assert B % block_rows == 0, "batch must be divisible by block_rows"
    n_tiles = B // block_rows
    assert n_tiles == 1 or block_rows % 16 == 0, (
        "multi-tile batches need 16-row-aligned tiles (bf16 h scratch)")

    kernel = functools.partial(_projection_head_kernel,
                               block_rows=block_rows, inv_batch=1.0 / B)

    # x is only consumed in phase 0: pin its block index to the LAST fetched
    # block in phases 1/2 so no redundant DMA is issued at the phase boundary.
    x_spec = pl.BlockSpec((block_rows, in_f),
                          lambda p, i: (jnp.where(p == 0, i, n_tiles - 1), 0))
    # Output is only produced in phase 2; pin its index to 0 in earlier phases.
    o_spec = pl.BlockSpec((block_rows, out_p),
                          lambda p, i: (jnp.where(p == 2, i, 0), 0))

    scratch = [
        pltpu.VMEM((B, hid_p), jnp.bfloat16),   # pre-BN h, all tiles (bf16)
        pltpu.VMEM((B, out_p), jnp.float32),    # pre-BN y, all tiles
        pltpu.VMEM((1, hid_p), jnp.float32),    # sum(h)
        pltpu.VMEM((1, hid_p), jnp.float32),    # sum(h*h)
        pltpu.VMEM((1, out_p), jnp.float32),    # sum(y)
        pltpu.VMEM((1, out_p), jnp.float32),    # sum(y*y)
        pltpu.VMEM((1, hid_p), jnp.float32),    # folded BN1 scale
        pltpu.VMEM((1, hid_p), jnp.float32),    # folded BN1 shift
        pltpu.VMEM((1, out_p), jnp.float32),    # folded BN2 scale
        pltpu.VMEM((1, out_p), jnp.float32),    # folded BN2 shift
    ]

    def build(single_buffer_resident):
        def resident(shape):  # weights / gamma / beta stay VMEM-resident
            if single_buffer_resident:
                return pl.BlockSpec(shape, lambda p, i: (0, 0),
                                    pipeline_mode=pl.Buffered(1))
            return pl.BlockSpec(shape, lambda p, i: (0, 0))

        return pl.pallas_call(
            kernel,
            out_shape=jax.ShapeDtypeStruct((B, out_p), out_dtype),
            grid_spec=pltpu.PrefetchScalarGridSpec(
                num_scalar_prefetch=0,
                grid=(3, n_tiles),                 # (phase, batch tile)
                in_specs=[
                    x_spec,
                    resident((in_f, hid_p)),       # W1 (bf16)
                    resident((1, hid_p)),          # gamma1
                    resident((1, hid_p)),          # beta1
                    resident((hid_p, out_p)),      # W2 (bf16)
                    resident((1, out_p)),          # gamma2
                    resident((1, out_p)),          # beta2
                ],
                out_specs=o_spec,
                scratch_shapes=scratch),
            compiler_params=pltpu.CompilerParams(
                # Both axes carry state (phase ordering + full-batch BN accumulators).
                dimension_semantics=("arbitrary", "arbitrary"),
                vmem_limit_bytes=vmem_limit_bytes),
        )

    args = (xb, w1p, g1p, b1p, w2p, g2p, b2p)
    try:
        # Resident operands single-buffered: saves one weight-sized VMEM copy.
        out_padded = build(True)(*args)
    except Exception:
        # Older JAX / unsupported pipeline_mode -> default double buffering.
        out_padded = build(False)(*args)

    return out_padded[:, :out_f]


def reference(x, w1, g1, b1, w2, g2, b2):
    """Pure-JAX reference with the kernel's precision policy: bf16 MXU matmuls
    with f32 accumulation, f32 BN stats from the f32 matmul result, and the
    pre-BN1 activations rounded to bf16 (mirrors the bf16 h scratch)."""
    h = jnp.dot(x.astype(jnp.bfloat16), w1.astype(jnp.bfloat16),
                preferred_element_type=jnp.float32)
    m = h.mean(0, keepdims=True)
    v = ((h - m) ** 2).mean(0, keepdims=True)
    hq = h.astype(jnp.bfloat16).astype(jnp.float32)   # bf16 h scratch roundtrip
    h1 = jnp.maximum((hq - m) / jnp.sqrt(v + BN_EPS) * g1 + b1, 0.0)
    y = jnp.dot(h1.astype(jnp.bfloat16), w2.astype(jnp.bfloat16),
                preferred_element_type=jnp.float32)
    m2 = y.mean(0, keepdims=True)
    v2 = ((y - m2) ** 2).mean(0, keepdims=True)
    return (y - m2) / jnp.sqrt(v2 + BN_EPS) * g2 + b2


if __name__ == "__main__":
    # Small shapes consistent with the module's forward:
    #   ProjectionHead(in_features=32, hidden_features=64, out_features=16)
    B, IN_F, HID_F, OUT_F = 32, 32, 64, 16

    key = jax.random.PRNGKey(0)
    kx, kw1, kw2, kg1, kb1, kg2, kb2 = jax.random.split(key, 7)

    x = jax.random.normal(kx, (B, IN_F), dtype=jnp.float32)
    # nn.Linear weights stored pre-transposed as (in, out); BN gamma ~1, beta ~0.
    w1 = jax.random.normal(kw1, (IN_F, HID_F), dtype=jnp.float32) * (1.0 / IN_F ** 0.5)
    w2 = jax.random.normal(kw2, (HID_F, OUT_F), dtype=jnp.float32) * (1.0 / HID_F ** 0.5)
    g1 = 1.0 + 0.1 * jax.random.normal(kg1, (1, HID_F), dtype=jnp.float32)
    b1 = 0.1 * jax.random.normal(kb1, (1, HID_F), dtype=jnp.float32)
    g2 = 1.0 + 0.1 * jax.random.normal(kg2, (1, OUT_F), dtype=jnp.float32)
    b2 = 0.1 * jax.random.normal(kb2, (1, OUT_F), dtype=jnp.float32)

    # block_rows=16 -> 2 batch tiles: exercises the accumulate/finalize BN path
    # (full-batch statistics gathered across tiles, not per-tile) with bf16-
    # sublane-aligned h scratch slices.
    out = projection_head(x, w1, g1, b1, w2, g2, b2, block_rows=16)
    out = jax.block_until_ready(out)

    ref = reference(x, w1, g1, b1, w2, g2, b2)
    assert out.shape == (B, OUT_F)
    max_err = float(jnp.max(jnp.abs(out - ref)))
    assert jnp.allclose(out, ref, atol=2e-3, rtol=2e-3), (
        f"mismatch vs reference (max |err| = {max_err})")

    print("KERNEL_OK")
</pallas_src>

<mosaic_0001>
module attributes {stable_mosaic.version = 11 : i64} {
  func.func @_projection_head_kernel(%arg0: i32, %arg1: i32, %arg2: memref<16x32xbf16, #tpu.memory_space<vmem>>, %arg3: memref<32x128xbf16, #tpu.memory_space<vmem>>, %arg4: memref<1x128xf32, #tpu.memory_space<vmem>>, %arg5: memref<1x128xf32, #tpu.memory_space<vmem>>, %arg6: memref<128x128xbf16, #tpu.memory_space<vmem>>, %arg7: memref<1x128xf32, #tpu.memory_space<vmem>>, %arg8: memref<1x128xf32, #tpu.memory_space<vmem>>, %arg9: memref<16x128xf32, #tpu.memory_space<vmem>>, %arg10: memref<32x128xbf16, #tpu.memory_space<vmem>>, %arg11: memref<32x128xf32, #tpu.memory_space<vmem>>, %arg12: memref<1x128xf32, #tpu.memory_space<vmem>>, %arg13: memref<1x128xf32, #tpu.memory_space<vmem>>, %arg14: memref<1x128xf32, #tpu.memory_space<vmem>>, %arg15: memref<1x128xf32, #tpu.memory_space<vmem>>, %arg16: memref<1x128xf32, #tpu.memory_space<vmem>>, %arg17: memref<1x128xf32, #tpu.memory_space<vmem>>, %arg18: memref<1x128xf32, #tpu.memory_space<vmem>>, %arg19: memref<1x128xf32, #tpu.memory_space<vmem>>) attributes {dimension_semantics = [#tpu.dimension_semantics<arbitrary>, #tpu.dimension_semantics<arbitrary>], iteration_bounds = array<i64: 3, 2>, scalar_prefetch = 0 : i64, scratch_operands = 10 : i64, tpu.core_type = #tpu.core_type<tc>, window_params = [{transform_indices = @transform_0, window_bounds = array<i64: 16, 32>}, {pipeline_mode = #tpu.pipeline_mode<synchronous>, transform_indices = @transform_1, window_bounds = array<i64: 32, 128>}, {pipeline_mode = #tpu.pipeline_mode<synchronous>, transform_indices = @transform_2, window_bounds = array<i64: 1, 128>}, {pipeline_mode = #tpu.pipeline_mode<synchronous>, transform_indices = @transform_3, window_bounds = array<i64: 1, 128>}, {pipeline_mode = #tpu.pipeline_mode<synchronous>, transform_indices = @transform_4, window_bounds = array<i64: 128, 128>}, {pipeline_mode = #tpu.pipeline_mode<synchronous>, transform_indices = @transform_5, window_bounds = array<i64: 1, 128>}, {pipeline_mode = #tpu.pipeline_mode<synchronous>, transform_indices = @transform_6, window_bounds = array<i64: 1, 128>}, {transform_indices = @transform_7, window_bounds = array<i64: 16, 128>}]} {
    %c16_i32 = arith.constant 16 : i32
    %0 = arith.muli %arg1, %c16_i32 : i32
    %1 = tpu.assume_multiple %0, 16 : i32
    %c0_i32 = arith.constant 0 : i32
    %2 = arith.cmpi eq, %arg0, %c0_i32 : i32
    %c0_i32_0 = arith.constant 0 : i32
    %3 = arith.cmpi eq, %arg1, %c0_i32_0 : i32
    %4 = arith.andi %2, %3 : i1
    %5 = arith.extui %4 : i1 to i32
    %c0_i32_1 = arith.constant 0 : i32
    %6 = arith.cmpi ne, %5, %c0_i32_1 : i32
    scf.if %6 {
      %cst = arith.constant 0.000000e+00 : f32
      %16 = vector.broadcast %cst : f32 to vector<1x128xf32>
      %c0 = arith.constant 0 : index
      %c0_6 = arith.constant 0 : index
      %17 = vector.load %arg12[%c0, %c0_6] : memref<1x128xf32, #tpu.memory_space<vmem>>, vector<1x128xf32>
      tpu.vector_store %arg12[%c0, %c0_6], %16 {strides = array<i32>} : memref<1x128xf32, #tpu.memory_space<vmem>>, vector<1x128xf32>,
      %cst_7 = arith.constant 0.000000e+00 : f32
      %18 = vector.broadcast %cst_7 : f32 to vector<1x128xf32>
      %c0_8 = arith.constant 0 : index
      %c0_9 = arith.constant 0 : index
      %19 = vector.load %arg13[%c0_8, %c0_9] : memref<1x128xf32, #tpu.memory_space<vmem>>, vector<1x128xf32>
      tpu.vector_store %arg13[%c0_8, %c0_9], %18 {strides = array<i32>} : memref<1x128xf32, #tpu.memory_space<vmem>>, vector<1x128xf32>,
      %cst_10 = arith.constant 0.000000e+00 : f32
      %20 = vector.broadcast %cst_10 : f32 to vector<1x128xf32>
      %c0_11 = arith.constant 0 : index
      %c0_12 = arith.constant 0 : index
      %21 = vector.load %arg14[%c0_11, %c0_12] : memref<1x128xf32, #tpu.memory_space<vmem>>, vector<1x128xf32>
      tpu.vector_store %arg14[%c0_11, %c0_12], %20 {strides = array<i32>} : memref<1x128xf32, #tpu.memory_space<vmem>>, vector<1x128xf32>,
      %cst_13 = arith.constant 0.000000e+00 : f32
      %22 = vector.broadcast %cst_13 : f32 to vector<1x128xf32>
      %c0_14 = arith.constant 0 : index
      %c0_15 = arith.constant 0 : index
      %23 = vector.load %arg15[%c0_14, %c0_15] : memref<1x128xf32, #tpu.memory_space<vmem>>, vector<1x128xf32>
      tpu.vector_store %arg15[%c0_14, %c0_15], %22 {strides = array<i32>} : memref<1x128xf32, #tpu.memory_space<vmem>>, vector<1x128xf32>,
    } else {
    }
    %c0_i32_2 = arith.constant 0 : i32
    %7 = arith.cmpi eq, %arg0, %c0_i32_2 : i32
    %8 = arith.extui %7 : i1 to i32
    %c0_i32_3 = arith.constant 0 : i32
    %9 = arith.cmpi ne, %8, %c0_i32_3 : i32
    scf.if %9 {
      %c0 = arith.constant 0 : index
      %c0_6 = arith.constant 0 : index
      %16 = vector.load %arg2[%c0, %c0_6] : memref<16x32xbf16, #tpu.memory_space<vmem>>, vector<16x32xbf16>
      %c0_7 = arith.constant 0 : index
      %c0_8 = arith.constant 0 : index
      %17 = vector.load %arg3[%c0_7, %c0_8] : memref<32x128xbf16, #tpu.memory_space<vmem>>, vector<32x128xbf16>
      %cst = arith.constant dense<0.000000e+00> : vector<16x128xf32>
      %18 = tpu.matmul %16, %17, %cst {dimension_numbers = #tpu.dot_dimension_numbers<[1], [0], [0], [1], [0, 0, 1, 1], [], []>} : vector<16x32xbf16>, vector<32x128xbf16>, vector<16x128xf32> -> vector<16x128xf32>
      %c0_9 = arith.constant 0 : index
      %c0_10 = arith.constant 0 : index
      %19 = vector.load %arg12[%c0_9, %c0_10] : memref<1x128xf32, #tpu.memory_space<vmem>>, vector<1x128xf32>
      %cst_11 = arith.constant dense<0.000000e+00> : vector<128xf32>
      %20 = vector.multi_reduction <add>, %18, %cst_11 [0] : vector<16x128xf32> to vector<128xf32>
      %21 = vector.shape_cast %20 : vector<128xf32> to vector<1x128xf32>
      %22 = arith.addf %19, %21 : vector<1x128xf32>
      %c0_12 = arith.constant 0 : index
      %c0_13 = arith.constant 0 : index
      %23 = vector.load %arg12[%c0_12, %c0_13] : memref<1x128xf32, #tpu.memory_space<vmem>>, vector<1x128xf32>
      tpu.vector_store %arg12[%c0_12, %c0_13], %22 {strides = array<i32>} : memref<1x128xf32, #tpu.memory_space<vmem>>, vector<1x128xf32>,
      %c0_14 = arith.constant 0 : index
      %c0_15 = arith.constant 0 : index
      %24 = vector.load %arg13[%c0_14, %c0_15] : memref<1x128xf32, #tpu.memory_space<vmem>>, vector<1x128xf32>
      %25 = arith.mulf %18, %18 : vector<16x128xf32>
      %cst_16 = arith.constant dense<0.000000e+00> : vector<128xf32>
      %26 = vector.multi_reduction <add>, %25, %cst_16 [0] : vector<16x128xf32> to vector<128xf32>
      %27 = vector.shape_cast %26 : vector<128xf32> to vector<1x128xf32>
      %28 = arith.addf %24, %27 : vector<1x128xf32>
      %c0_17 = arith.constant 0 : index
      %c0_18 = arith.constant 0 : index
      %29 = vector.load %arg13[%c0_17, %c0_18] : memref<1x128xf32, #tpu.memory_space<vmem>>, vector<1x128xf32>
      tpu.vector_store %arg13[%c0_17, %c0_18], %28 {strides = array<i32>} : memref<1x128xf32, #tpu.memory_space<vmem>>, vector<1x128xf32>,
      %30 = arith.truncf %18 : vector<16x128xf32> to vector<16x128xbf16>
      %31 = arith.index_cast %1 : i32 to index
      %c0_19 = arith.constant 0 : index
      %32 = vector.load %arg10[%31, %c0_19] : memref<32x128xbf16, #tpu.memory_space<vmem>>, vector<16x128xbf16>
      tpu.vector_store %arg10[%31, %c0_19], %30 {strides = array<i32>} : memref<32x128xbf16, #tpu.memory_space<vmem>>, vector<16x128xbf16>,
    } else {
    }
    %c1_i32 = arith.constant 1 : i32
    %10 = arith.cmpi eq, %arg0, %c1_i32 : i32
    %11 = arith.extui %10 : i1 to i32
    %c0_i32_4 = arith.constant 0 : i32
    %12 = arith.cmpi ne, %11, %c0_i32_4 : i32
    scf.if %12 {
      %c0_i32_6 = arith.constant 0 : i32
      %16 = arith.cmpi eq, %arg1, %c0_i32_6 : i32
      %17 = arith.extui %16 : i1 to i32
      %c0_i32_7 = arith.constant 0 : i32
      %18 = arith.cmpi ne, %17, %c0_i32_7 : i32
      scf.if %18 {
        %c0_26 = arith.constant 0 : index
        %c0_27 = arith.constant 0 : index
        %46 = vector.load %arg12[%c0_26, %c0_27] : memref<1x128xf32, #tpu.memory_space<vmem>>, vector<1x128xf32>
        %cst_28 = arith.constant 3.125000e-02 : f32
        %47 = vector.broadcast %cst_28 : f32 to vector<1x128xf32>
        %48 = arith.mulf %46, %47 : vector<1x128xf32>
        %c0_29 = arith.constant 0 : index
        %c0_30 = arith.constant 0 : index
        %49 = vector.load %arg13[%c0_29, %c0_30] : memref<1x128xf32, #tpu.memory_space<vmem>>, vector<1x128xf32>
        %cst_31 = arith.constant 3.125000e-02 : f32
        %50 = vector.broadcast %cst_31 : f32 to vector<1x128xf32>
        %51 = arith.mulf %49, %50 : vector<1x128xf32>
        %52 = arith.mulf %48, %48 : vector<1x128xf32>
        %53 = arith.subf %51, %52 : vector<1x128xf32>
        %cst_32 = arith.constant 0.000000e+00 : f32
        %54 = vector.broadcast %cst_32 : f32 to vector<1x128xf32>
        %55 = arith.maximumf %53, %54 : vector<1x128xf32>
        %c0_33 = arith.constant 0 : index
        %c0_34 = arith.constant 0 : index
        %56 = vector.load %arg4[%c0_33, %c0_34] : memref<1x128xf32, #tpu.memory_space<vmem>>, vector<1x128xf32>
        %cst_35 = arith.constant 9.99999974E-6 : f32
        %57 = vector.broadcast %cst_35 : f32 to vector<1x128xf32>
        %58 = arith.addf %55, %57 : vector<1x128xf32>
        %59 = math.rsqrt %58 : vector<1x128xf32>
        %60 = arith.mulf %56, %59 : vector<1x128xf32>
        %c0_36 = arith.constant 0 : index
        %c0_37 = arith.constant 0 : index
        %61 = vector.load %arg16[%c0_36, %c0_37] : memref<1x128xf32, #tpu.memory_space<vmem>>, vector<1x128xf32>
        tpu.vector_store %arg16[%c0_36, %c0_37], %60 {strides = array<i32>} : memref<1x128xf32, #tpu.memory_space<vmem>>, vector<1x128xf32>,
        %c0_38 = arith.constant 0 : index
        %c0_39 = arith.constant 0 : index
        %62 = vector.load %arg5[%c0_38, %c0_39] : memref<1x128xf32, #tpu.memory_space<vmem>>, vector<1x128xf32>
        %63 = arith.mulf %48, %60 : vector<1x128xf32>
        %64 = arith.subf %62, %63 : vector<1x128xf32>
        %c0_40 = arith.constant 0 : index
        %c0_41 = arith.constant 0 : index
        %65 = vector.load %arg17[%c0_40, %c0_41] : memref<1x128xf32, #tpu.memory_space<vmem>>, vector<1x128xf32>
        tpu.vector_store %arg17[%c0_40, %c0_41], %64 {strides = array<i32>} : memref<1x128xf32, #tpu.memory_space<vmem>>, vector<1x128xf32>,
      } else {
      }
      %19 = arith.index_cast %1 : i32 to index
      %c0 = arith.constant 0 : index
      %20 = vector.load %arg10[%19, %c0] : memref<32x128xbf16, #tpu.memory_space<vmem>>, vector<16x128xbf16>
      %21 = arith.extf %20 : vector<16x128xbf16> to vector<16x128xf32>
      %c0_8 = arith.constant 0 : index
      %c0_9 = arith.constant 0 : index
      %22 = vector.load %arg16[%c0_8, %c0_9] : memref<1x128xf32, #tpu.memory_space<vmem>>, vector<1x128xf32>
      %23 = vector.broadcast %22 : vector<1x128xf32> to vector<16x128xf32>
      %24 = arith.mulf %21, %23 : vector<16x128xf32>
      %c0_10 = arith.constant 0 : index
      %c0_11 = arith.constant 0 : index
      %25 = vector.load %arg17[%c0_10, %c0_11] : memref<1x128xf32, #tpu.memory_space<vmem>>, vector<1x128xf32>
      %26 = vector.broadcast %25 : vector<1x128xf32> to vector<16x128xf32>
      %27 = arith.addf %24, %26 : vector<16x128xf32>
      %cst = arith.constant 0.000000e+00 : f32
      %28 = vector.broadcast %cst : f32 to vector<16x128xf32>
      %29 = arith.maximumf %27, %28 : vector<16x128xf32>
      %30 = arith.truncf %29 : vector<16x128xf32> to vector<16x128xbf16>
      %c0_12 = arith.constant 0 : index
      %c0_13 = arith.constant 0 : index
      %31 = vector.load %arg6[%c0_12, %c0_13] : memref<128x128xbf16, #tpu.memory_space<vmem>>, vector<128x128xbf16>
      %cst_14 = arith.constant dense<0.000000e+00> : vector<16x128xf32>
      %32 = tpu.matmul %30, %31, %cst_14 {dimension_numbers = #tpu.dot_dimension_numbers<[1], [0], [0], [1], [0, 0, 1, 1], [], []>} : vector<16x128xbf16>, vector<128x128xbf16>, vector<16x128xf32> -> vector<16x128xf32>
      %c0_15 = arith.constant 0 : index
      %c0_16 = arith.constant 0 : index
      %33 = vector.load %arg14[%c0_15, %c0_16] : memref<1x128xf32, #tpu.memory_space<vmem>>, vector<1x128xf32>
      %cst_17 = arith.constant dense<0.000000e+00> : vector<128xf32>
      %34 = vector.multi_reduction <add>, %32, %cst_17 [0] : vector<16x128xf32> to vector<128xf32>
      %35 = vector.shape_cast %34 : vector<128xf32> to vector<1x128xf32>
      %36 = arith.addf %33, %35 : vector<1x128xf32>
      %c0_18 = arith.constant 0 : index
      %c0_19 = arith.constant 0 : index
      %37 = vector.load %arg14[%c0_18, %c0_19] : memref<1x128xf32, #tpu.memory_space<vmem>>, vector<1x128xf32>
      tpu.vector_store %arg14[%c0_18, %c0_19], %36 {strides = array<i32>} : memref<1x128xf32, #tpu.memory_space<vmem>>, vector<1x128xf32>,
      %c0_20 = arith.constant 0 : index
      %c0_21 = arith.constant 0 : index
      %38 = vector.load %arg15[%c0_20, %c0_21] : memref<1x128xf32, #tpu.memory_space<vmem>>, vector<1x128xf32>
      %39 = arith.mulf %32, %32 : vector<16x128xf32>
      %cst_22 = arith.constant dense<0.000000e+00> : vector<128xf32>
      %40 = vector.multi_reduction <add>, %39, %cst_22 [0] : vector<16x128xf32> to vector<128xf32>
      %41 = vector.shape_cast %40 : vector<128xf32> to vector<1x128xf32>
      %42 = arith.addf %38, %41 : vector<1x128xf32>
      %c0_23 = arith.constant 0 : index
      %c0_24 = arith.constant 0 : index
      %43 = vector.load %arg15[%c0_23, %c0_24] : memref<1x128xf32, #tpu.memory_space<vmem>>, vector<1x128xf32>
      tpu.vector_store %arg15[%c0_23, %c0_24], %42 {strides = array<i32>} : memref<1x128xf32, #tpu.memory_space<vmem>>, vector<1x128xf32>,
      %44 = arith.index_cast %1 : i32 to index
      %c0_25 = arith.constant 0 : index
      %45 = vector.load %arg11[%44, %c0_25] : memref<32x128xf32, #tpu.memory_space<vmem>>, vector<16x128xf32>
      tpu.vector_store %arg11[%44, %c0_25], %32 {strides = array<i32>} : memref<32x128xf32, #tpu.memory_space<vmem>>, vector<16x128xf32>,
    } else {
    }
    %c2_i32 = arith.constant 2 : i32
    %13 = arith.cmpi eq, %arg0, %c2_i32 : i32
    %14 = arith.extui %13 : i1 to i32
    %c0_i32_5 = arith.constant 0 : i32
    %15 = arith.cmpi ne, %14, %c0_i32_5 : i32
    scf.if %15 {
      %c0_i32_6 = arith.constant 0 : i32
      %16 = arith.cmpi eq, %arg1, %c0_i32_6 : i32
      %17 = arith.extui %16 : i1 to i32
      %c0_i32_7 = arith.constant 0 : i32
      %18 = arith.cmpi ne, %17, %c0_i32_7 : i32
      scf.if %18 {
        %c0_14 = arith.constant 0 : index
        %c0_15 = arith.constant 0 : index
        %28 = vector.load %arg14[%c0_14, %c0_15] : memref<1x128xf32, #tpu.memory_space<vmem>>, vector<1x128xf32>
        %cst = arith.constant 3.125000e-02 : f32
        %29 = vector.broadcast %cst : f32 to vector<1x128xf32>
        %30 = arith.mulf %28, %29 : vector<1x128xf32>
        %c0_16 = arith.constant 0 : index
        %c0_17 = arith.constant 0 : index
        %31 = vector.load %arg15[%c0_16, %c0_17] : memref<1x128xf32, #tpu.memory_space<vmem>>, vector<1x128xf32>
        %cst_18 = arith.constant 3.125000e-02 : f32
        %32 = vector.broadcast %cst_18 : f32 to vector<1x128xf32>
        %33 = arith.mulf %31, %32 : vector<1x128xf32>
        %34 = arith.mulf %30, %30 : vector<1x128xf32>
        %35 = arith.subf %33, %34 : vector<1x128xf32>
        %cst_19 = arith.constant 0.000000e+00 : f32
        %36 = vector.broadcast %cst_19 : f32 to vector<1x128xf32>
        %37 = arith.maximumf %35, %36 : vector<1x128xf32>
        %c0_20 = arith.constant 0 : index
        %c0_21 = arith.constant 0 : index
        %38 = vector.load %arg7[%c0_20, %c0_21] : memref<1x128xf32, #tpu.memory_space<vmem>>, vector<1x128xf32>
        %cst_22 = arith.constant 9.99999974E-6 : f32
        %39 = vector.broadcast %cst_22 : f32 to vector<1x128xf32>
        %40 = arith.addf %37, %39 : vector<1x128xf32>
        %41 = math.rsqrt %40 : vector<1x128xf32>
        %42 = arith.mulf %38, %41 : vector<1x128xf32>
        %c0_23 = arith.constant 0 : index
        %c0_24 = arith.constant 0 : index
        %43 = vector.load %arg18[%c0_23, %c0_24] : memref<1x128xf32, #tpu.memory_space<vmem>>, vector<1x128xf32>
        tpu.vector_store %arg18[%c0_23, %c0_24], %42 {strides = array<i32>} : memref<1x128xf32, #tpu.memory_space<vmem>>, vector<1x128xf32>,
        %c0_25 = arith.constant 0 : index
        %c0_26 = arith.constant 0 : index
        %44 = vector.load %arg8[%c0_25, %c0_26] : memref<1x128xf32, #tpu.memory_space<vmem>>, vector<1x128xf32>
        %45 = arith.mulf %30, %42 : vector<1x128xf32>
        %46 = arith.subf %44, %45 : vector<1x128xf32>
        %c0_27 = arith.constant 0 : index
        %c0_28 = arith.constant 0 : index
        %47 = vector.load %arg19[%c0_27, %c0_28] : memref<1x128xf32, #tpu.memory_space<vmem>>, vector<1x128xf32>
        tpu.vector_store %arg19[%c0_27, %c0_28], %46 {strides = array<i32>} : memref<1x128xf32, #tpu.memory_space<vmem>>, vector<1x128xf32>,
      } else {
      }
      %19 = arith.index_cast %1 : i32 to index
      %c0 = arith.constant 0 : index
      %20 = vector.load %arg11[%19, %c0] : memref<32x128xf32, #tpu.memory_space<vmem>>, vector<16x128xf32>
      %c0_8 = arith.constant 0 : index
      %c0_9 = arith.constant 0 : index
      %21 = vector.load %arg18[%c0_8, %c0_9] : memref<1x128xf32, #tpu.memory_space<vmem>>, vector<1x128xf32>
      %22 = vector.broadcast %21 : vector<1x128xf32> to vector<16x128xf32>
      %23 = arith.mulf %20, %22 : vector<16x128xf32>
      %c0_10 = arith.constant 0 : index
      %c0_11 = arith.constant 0 : index
      %24 = vector.load %arg19[%c0_10, %c0_11] : memref<1x128xf32, #tpu.memory_space<vmem>>, vector<1x128xf32>
      %25 = vector.broadcast %24 : vector<1x128xf32> to vector<16x128xf32>
      %26 = arith.addf %23, %25 : vector<16x128xf32>
      %c0_12 = arith.constant 0 : index
      %c0_13 = arith.constant 0 : index
      %27 = vector.load %arg9[%c0_12, %c0_13] : memref<16x128xf32, #tpu.memory_space<vmem>>, vector<16x128xf32>
      tpu.vector_store %arg9[%c0_12, %c0_13], %26 {strides = array<i32>} : memref<16x128xf32, #tpu.memory_space<vmem>>, vector<16x128xf32>,
    } else {
    }
    return
  }
  func.func @transform_0(%arg0: i32, %arg1: i32) -> (i32, i32) {
    %c0_i32 = arith.constant 0 : i32
    %0 = arith.cmpi eq, %arg0, %c0_i32 : i32
    %c1_i32 = arith.constant 1 : i32
    %1 = arith.select %0, %arg1, %c1_i32 : i32
    %c0_i32_0 = arith.constant 0 : i32
    %c0_i32_1 = arith.constant 0 : i32
    return %1, %c0_i32_0 : i32, i32
  }
  func.func @transform_1(%arg0: i32, %arg1: i32) -> (i32, i32) {
    %c0_i32 = arith.constant 0 : i32
    %c0_i32_0 = arith.constant 0 : i32
    %c0_i32_1 = arith.constant 0 : i32
    return %c0_i32, %c0_i32_0 : i32, i32
  }
  func.func @transform_2(%arg0: i32, %arg1: i32) -> (i32, i32) {
    %c0_i32 = arith.constant 0 : i32
    %c0_i32_0 = arith.constant 0 : i32
    %c0_i32_1 = arith.constant 0 : i32
    return %c0_i32, %c0_i32_0 : i32, i32
  }
  func.func @transform_3(%arg0: i32, %arg1: i32) -> (i32, i32) {
    %c0_i32 = arith.constant 0 : i32
    %c0_i32_0 = arith.constant 0 : i32
    %c0_i32_1 = arith.constant 0 : i32
    return %c0_i32, %c0_i32_0 : i32, i32
  }
  func.func @transform_4(%arg0: i32, %arg1: i32) -> (i32, i32) {
    %c0_i32 = arith.constant 0 : i32
    %c0_i32_0 = arith.constant 0 : i32
    %c0_i32_1 = arith.constant 0 : i32
    return %c0_i32, %c0_i32_0 : i32, i32
  }
  func.func @transform_5(%arg0: i32, %arg1: i32) -> (i32, i32) {
    %c0_i32 = arith.constant 0 : i32
    %c0_i32_0 = arith.constant 0 : i32
    %c0_i32_1 = arith.constant 0 : i32
    return %c0_i32, %c0_i32_0 : i32, i32
  }
  func.func @transform_6(%arg0: i32, %arg1: i32) -> (i32, i32) {
    %c0_i32 = arith.constant 0 : i32
    %c0_i32_0 = arith.constant 0 : i32
    %c0_i32_1 = arith.constant 0 : i32
    return %c0_i32, %c0_i32_0 : i32, i32
  }
  func.func @transform_7(%arg0: i32, %arg1: i32) -> (i32, i32) {
    %c2_i32 = arith.constant 2 : i32
    %0 = arith.cmpi eq, %arg0, %c2_i32 : i32
    %c0_i32 = arith.constant 0 : i32
    %1 = arith.select %0, %arg1, %c0_i32 : i32
    %c0_i32_0 = arith.constant 0 : i32
    %c0_i32_1 = arith.constant 0 : i32
    return %1, %c0_i32_0 : i32, i32
  }
}

module attributes {stable_mosaic.version = 11 : i64} {
  func.func @_projection_head_kernel(%arg0: i32, %arg1: i32, %arg2: memref<16x32xbf16, #tpu.memory_space<vmem>>, %arg3: memref<32x128xbf16, #tpu.memory_space<vmem>>, %arg4: memref<1x128xf32, #tpu.memory_space<vmem>>, %arg5: memref<1x128xf32, #tpu.memory_space<vmem>>, %arg6: memref<128x128xbf16, #tpu.memory_space<vmem>>, %arg7: memref<1x128xf32, #tpu.memory_space<vmem>>, %arg8: memref<1x128xf32, #tpu.memory_space<vmem>>, %arg9: memref<16x128xf32, #tpu.memory_space<vmem>>, %arg10: memref<32x128xbf16, #tpu.memory_space<vmem>>, %arg11: memref<32x128xf32, #tpu.memory_space<vmem>>, %arg12: memref<1x128xf32, #tpu.memory_space<vmem>>, %arg13: memref<1x128xf32, #tpu.memory_space<vmem>>, %arg14: memref<1x128xf32, #tpu.memory_space<vmem>>, %arg15: memref<1x128xf32, #tpu.memory_space<vmem>>, %arg16: memref<1x128xf32, #tpu.memory_space<vmem>>, %arg17: memref<1x128xf32, #tpu.memory_space<vmem>>, %arg18: memref<1x128xf32, #tpu.memory_space<vmem>>, %arg19: memref<1x128xf32, #tpu.memory_space<vmem>>) attributes {dimension_semantics = [#tpu.dimension_semantics<arbitrary>, #tpu.dimension_semantics<arbitrary>], iteration_bounds = array<i64: 3, 2>, scalar_prefetch = 0 : i64, scratch_operands = 10 : i64, tpu.core_type = #tpu.core_type<tc>, window_params = [{transform_indices = @transform_0, window_bounds = array<i64: 16, 32>}, {pipeline_mode = #tpu.pipeline_mode<synchronous>, transform_indices = @transform_1, window_bounds = array<i64: 32, 128>}, {pipeline_mode = #tpu.pipeline_mode<synchronous>, transform_indices = @transform_2, window_bounds = array<i64: 1, 128>}, {pipeline_mode = #tpu.pipeline_mode<synchronous>, transform_indices = @transform_3, window_bounds = array<i64: 1, 128>}, {pipeline_mode = #tpu.pipeline_mode<synchronous>, transform_indices = @transform_4, window_bounds = array<i64: 128, 128>}, {pipeline_mode = #tpu.pipeline_mode<synchronous>, transform_indices = @transform_5, window_bounds = array<i64: 1, 128>}, {pipeline_mode = #tpu.pipeline_mode<synchronous>, transform_indices = @transform_6, window_bounds = array<i64: 1, 128>}, {transform_indices = @transform_7, window_bounds = array<i64: 16, 128>}]} {
    %c16_i32 = arith.constant 16 : i32
    %0 = arith.muli %arg1, %c16_i32 : i32
    %1 = tpu.assume_multiple %0, 16 : i32
    %c0_i32 = arith.constant 0 : i32
    %2 = arith.cmpi eq, %arg0, %c0_i32 : i32
    %c0_i32_0 = arith.constant 0 : i32
    %3 = arith.cmpi eq, %arg1, %c0_i32_0 : i32
    %4 = arith.andi %2, %3 : i1
    %5 = arith.extui %4 : i1 to i32
    %c0_i32_1 = arith.constant 0 : i32
    %6 = arith.cmpi ne, %5, %c0_i32_1 : i32
    scf.if %6 {
      %cst = arith.constant 0.000000e+00 : f32
      %16 = vector.broadcast %cst : f32 to vector<1x128xf32>
      %c0 = arith.constant 0 : index
      %c0_6 = arith.constant 0 : index
      %17 = vector.load %arg12[%c0, %c0_6] : memref<1x128xf32, #tpu.memory_space<vmem>>, vector<1x128xf32>
      tpu.vector_store %arg12[%c0, %c0_6], %16 {strides = array<i32>} : memref<1x128xf32, #tpu.memory_space<vmem>>, vector<1x128xf32>,
      %cst_7 = arith.constant 0.000000e+00 : f32
      %18 = vector.broadcast %cst_7 : f32 to vector<1x128xf32>
      %c0_8 = arith.constant 0 : index
      %c0_9 = arith.constant 0 : index
      %19 = vector.load %arg13[%c0_8, %c0_9] : memref<1x128xf32, #tpu.memory_space<vmem>>, vector<1x128xf32>
      tpu.vector_store %arg13[%c0_8, %c0_9], %18 {strides = array<i32>} : memref<1x128xf32, #tpu.memory_space<vmem>>, vector<1x128xf32>,
      %cst_10 = arith.constant 0.000000e+00 : f32
      %20 = vector.broadcast %cst_10 : f32 to vector<1x128xf32>
      %c0_11 = arith.constant 0 : index
      %c0_12 = arith.constant 0 : index
      %21 = vector.load %arg14[%c0_11, %c0_12] : memref<1x128xf32, #tpu.memory_space<vmem>>, vector<1x128xf32>
      tpu.vector_store %arg14[%c0_11, %c0_12], %20 {strides = array<i32>} : memref<1x128xf32, #tpu.memory_space<vmem>>, vector<1x128xf32>,
      %cst_13 = arith.constant 0.000000e+00 : f32
      %22 = vector.broadcast %cst_13 : f32 to vector<1x128xf32>
      %c0_14 = arith.constant 0 : index
      %c0_15 = arith.constant 0 : index
      %23 = vector.load %arg15[%c0_14, %c0_15] : memref<1x128xf32, #tpu.memory_space<vmem>>, vector<1x128xf32>
      tpu.vector_store %arg15[%c0_14, %c0_15], %22 {strides = array<i32>} : memref<1x128xf32, #tpu.memory_space<vmem>>, vector<1x128xf32>,
    } else {
    }
    %c0_i32_2 = arith.constant 0 : i32
    %7 = arith.cmpi eq, %arg0, %c0_i32_2 : i32
    %8 = arith.extui %7 : i1 to i32
    %c0_i32_3 = arith.constant 0 : i32
    %9 = arith.cmpi ne, %8, %c0_i32_3 : i32
    scf.if %9 {
      %c0 = arith.constant 0 : index
      %c0_6 = arith.constant 0 : index
      %16 = vector.load %arg2[%c0, %c0_6] : memref<16x32xbf16, #tpu.memory_space<vmem>>, vector<16x32xbf16>
      %c0_7 = arith.constant 0 : index
      %c0_8 = arith.constant 0 : index
      %17 = vector.load %arg3[%c0_7, %c0_8] : memref<32x128xbf16, #tpu.memory_space<vmem>>, vector<32x128xbf16>
      %cst = arith.constant dense<0.000000e+00> : vector<16x128xf32>
      %18 = tpu.matmul %16, %17, %cst {dimension_numbers = #tpu.dot_dimension_numbers<[1], [0], [0], [1], [0, 0, 1, 1], [], []>} : vector<16x32xbf16>, vector<32x128xbf16>, vector<16x128xf32> -> vector<16x128xf32>
      %c0_9 = arith.constant 0 : index
      %c0_10 = arith.constant 0 : index
      %19 = vector.load %arg12[%c0_9, %c0_10] : memref<1x128xf32, #tpu.memory_space<vmem>>, vector<1x128xf32>
      %cst_11 = arith.constant dense<0.000000e+00> : vector<128xf32>
      %20 = vector.multi_reduction <add>, %18, %cst_11 [0] : vector<16x128xf32> to vector<128xf32>
      %21 = vector.shape_cast %20 : vector<128xf32> to vector<1x128xf32>
      %22 = arith.addf %19, %21 : vector<1x128xf32>
      %c0_12 = arith.constant 0 : index
      %c0_13 = arith.constant 0 : index
      %23 = vector.load %arg12[%c0_12, %c0_13] : memref<1x128xf32, #tpu.memory_space<vmem>>, vector<1x128xf32>
      tpu.vector_store %arg12[%c0_12, %c0_13], %22 {strides = array<i32>} : memref<1x128xf32, #tpu.memory_space<vmem>>, vector<1x128xf32>,
      %c0_14 = arith.constant 0 : index
      %c0_15 = arith.constant 0 : index
      %24 = vector.load %arg13[%c0_14, %c0_15] : memref<1x128xf32, #tpu.memory_space<vmem>>, vector<1x128xf32>
      %25 = arith.mulf %18, %18 : vector<16x128xf32>
      %cst_16 = arith.constant dense<0.000000e+00> : vector<128xf32>
      %26 = vector.multi_reduction <add>, %25, %cst_16 [0] : vector<16x128xf32> to vector<128xf32>
      %27 = vector.shape_cast %26 : vector<128xf32> to vector<1x128xf32>
      %28 = arith.addf %24, %27 : vector<1x128xf32>
      %c0_17 = arith.constant 0 : index
      %c0_18 = arith.constant 0 : index
      %29 = vector.load %arg13[%c0_17, %c0_18] : memref<1x128xf32, #tpu.memory_space<vmem>>, vector<1x128xf32>
      tpu.vector_store %arg13[%c0_17, %c0_18], %28 {strides = array<i32>} : memref<1x128xf32, #tpu.memory_space<vmem>>, vector<1x128xf32>,
      %30 = arith.truncf %18 : vector<16x128xf32> to vector<16x128xbf16>
      %31 = arith.index_cast %1 : i32 to index
      %c0_19 = arith.constant 0 : index
      %32 = vector.load %arg10[%31, %c0_19] : memref<32x128xbf16, #tpu.memory_space<vmem>>, vector<16x128xbf16>
      tpu.vector_store %arg10[%31, %c0_19], %30 {strides = array<i32>} : memref<32x128xbf16, #tpu.memory_space<vmem>>, vector<16x128xbf16>,
    } else {
    }
    %c1_i32 = arith.constant 1 : i32
    %10 = arith.cmpi eq, %arg0, %c1_i32 : i32
    %11 = arith.extui %10 : i1 to i32
    %c0_i32_4 = arith.constant 0 : i32
    %12 = arith.cmpi ne, %11, %c0_i32_4 : i32
    scf.if %12 {
      %c0_i32_6 = arith.constant 0 : i32
      %16 = arith.cmpi eq, %arg1, %c0_i32_6 : i32
      %17 = arith.extui %16 : i1 to i32
      %c0_i32_7 = arith.constant 0 : i32
      %18 = arith.cmpi ne, %17, %c0_i32_7 : i32
      scf.if %18 {
        %c0_26 = arith.constant 0 : index
        %c0_27 = arith.constant 0 : index
        %46 = vector.load %arg12[%c0_26, %c0_27] : memref<1x128xf32, #tpu.memory_space<vmem>>, vector<1x128xf32>
        %cst_28 = arith.constant 3.125000e-02 : f32
        %47 = vector.broadcast %cst_28 : f32 to vector<1x128xf32>
        %48 = arith.mulf %46, %47 : vector<1x128xf32>
        %c0_29 = arith.constant 0 : index
        %c0_30 = arith.constant 0 : index
        %49 = vector.load %arg13[%c0_29, %c0_30] : memref<1x128xf32, #tpu.memory_space<vmem>>, vector<1x128xf32>
        %cst_31 = arith.constant 3.125000e-02 : f32
        %50 = vector.broadcast %cst_31 : f32 to vector<1x128xf32>
        %51 = arith.mulf %49, %50 : vector<1x128xf32>
        %52 = arith.mulf %48, %48 : vector<1x128xf32>
        %53 = arith.subf %51, %52 : vector<1x128xf32>
        %cst_32 = arith.constant 0.000000e+00 : f32
        %54 = vector.broadcast %cst_32 : f32 to vector<1x128xf32>
        %55 = arith.maximumf %53, %54 : vector<1x128xf32>
        %c0_33 = arith.constant 0 : index
        %c0_34 = arith.constant 0 : index
        %56 = vector.load %arg4[%c0_33, %c0_34] : memref<1x128xf32, #tpu.memory_space<vmem>>, vector<1x128xf32>
        %cst_35 = arith.constant 9.99999974E-6 : f32
        %57 = vector.broadcast %cst_35 : f32 to vector<1x128xf32>
        %58 = arith.addf %55, %57 : vector<1x128xf32>
        %59 = math.rsqrt %58 : vector<1x128xf32>
        %60 = arith.mulf %56, %59 : vector<1x128xf32>
        %c0_36 = arith.constant 0 : index
        %c0_37 = arith.constant 0 : index
        %61 = vector.load %arg16[%c0_36, %c0_37] : memref<1x128xf32, #tpu.memory_space<vmem>>, vector<1x128xf32>
        tpu.vector_store %arg16[%c0_36, %c0_37], %60 {strides = array<i32>} : memref<1x128xf32, #tpu.memory_space<vmem>>, vector<1x128xf32>,
        %c0_38 = arith.constant 0 : index
        %c0_39 = arith.constant 0 : index
        %62 = vector.load %arg5[%c0_38, %c0_39] : memref<1x128xf32, #tpu.memory_space<vmem>>, vector<1x128xf32>
        %63 = arith.mulf %48, %60 : vector<1x128xf32>
        %64 = arith.subf %62, %63 : vector<1x128xf32>
        %c0_40 = arith.constant 0 : index
        %c0_41 = arith.constant 0 : index
        %65 = vector.load %arg17[%c0_40, %c0_41] : memref<1x128xf32, #tpu.memory_space<vmem>>, vector<1x128xf32>
        tpu.vector_store %arg17[%c0_40, %c0_41], %64 {strides = array<i32>} : memref<1x128xf32, #tpu.memory_space<vmem>>, vector<1x128xf32>,
      } else {
      }
      %19 = arith.index_cast %1 : i32 to index
      %c0 = arith.constant 0 : index
      %20 = vector.load %arg10[%19, %c0] : memref<32x128xbf16, #tpu.memory_space<vmem>>, vector<16x128xbf16>
      %21 = arith.extf %20 : vector<16x128xbf16> to vector<16x128xf32>
      %c0_8 = arith.constant 0 : index
      %c0_9 = arith.constant 0 : index
      %22 = vector.load %arg16[%c0_8, %c0_9] : memref<1x128xf32, #tpu.memory_space<vmem>>, vector<1x128xf32>
      %23 = vector.broadcast %22 : vector<1x128xf32> to vector<16x128xf32>
      %24 = arith.mulf %21, %23 : vector<16x128xf32>
      %c0_10 = arith.constant 0 : index
      %c0_11 = arith.constant 0 : index
      %25 = vector.load %arg17[%c0_10, %c0_11] : memref<1x128xf32, #tpu.memory_space<vmem>>, vector<1x128xf32>
      %26 = vector.broadcast %25 : vector<1x128xf32> to vector<16x128xf32>
      %27 = arith.addf %24, %26 : vector<16x128xf32>
      %cst = arith.constant 0.000000e+00 : f32
      %28 = vector.broadcast %cst : f32 to vector<16x128xf32>
      %29 = arith.maximumf %27, %28 : vector<16x128xf32>
      %30 = arith.truncf %29 : vector<16x128xf32> to vector<16x128xbf16>
      %c0_12 = arith.constant 0 : index
      %c0_13 = arith.constant 0 : index
      %31 = vector.load %arg6[%c0_12, %c0_13] : memref<128x128xbf16, #tpu.memory_space<vmem>>, vector<128x128xbf16>
      %cst_14 = arith.constant dense<0.000000e+00> : vector<16x128xf32>
      %32 = tpu.matmul %30, %31, %cst_14 {dimension_numbers = #tpu.dot_dimension_numbers<[1], [0], [0], [1], [0, 0, 1, 1], [], []>} : vector<16x128xbf16>, vector<128x128xbf16>, vector<16x128xf32> -> vector<16x128xf32>
      %c0_15 = arith.constant 0 : index
      %c0_16 = arith.constant 0 : index
      %33 = vector.load %arg14[%c0_15, %c0_16] : memref<1x128xf32, #tpu.memory_space<vmem>>, vector<1x128xf32>
      %cst_17 = arith.constant dense<0.000000e+00> : vector<128xf32>
      %34 = vector.multi_reduction <add>, %32, %cst_17 [0] : vector<16x128xf32> to vector<128xf32>
      %35 = vector.shape_cast %34 : vector<128xf32> to vector<1x128xf32>
      %36 = arith.addf %33, %35 : vector<1x128xf32>
      %c0_18 = arith.constant 0 : index
      %c0_19 = arith.constant 0 : index
      %37 = vector.load %arg14[%c0_18, %c0_19] : memref<1x128xf32, #tpu.memory_space<vmem>>, vector<1x128xf32>
      tpu.vector_store %arg14[%c0_18, %c0_19], %36 {strides = array<i32>} : memref<1x128xf32, #tpu.memory_space<vmem>>, vector<1x128xf32>,
      %c0_20 = arith.constant 0 : index
      %c0_21 = arith.constant 0 : index
      %38 = vector.load %arg15[%c0_20, %c0_21] : memref<1x128xf32, #tpu.memory_space<vmem>>, vector<1x128xf32>
      %39 = arith.mulf %32, %32 : vector<16x128xf32>
      %cst_22 = arith.constant dense<0.000000e+00> : vector<128xf32>
      %40 = vector.multi_reduction <add>, %39, %cst_22 [0] : vector<16x128xf32> to vector<128xf32>
      %41 = vector.shape_cast %40 : vector<128xf32> to vector<1x128xf32>
      %42 = arith.addf %38, %41 : vector<1x128xf32>
      %c0_23 = arith.constant 0 : index
      %c0_24 = arith.constant 0 : index
      %43 = vector.load %arg15[%c0_23, %c0_24] : memref<1x128xf32, #tpu.memory_space<vmem>>, vector<1x128xf32>
      tpu.vector_store %arg15[%c0_23, %c0_24], %42 {strides = array<i32>} : memref<1x128xf32, #tpu.memory_space<vmem>>, vector<1x128xf32>,
      %44 = arith.index_cast %1 : i32 to index
      %c0_25 = arith.constant 0 : index
      %45 = vector.load %arg11[%44, %c0_25] : memref<32x128xf32, #tpu.memory_space<vmem>>, vector<16x128xf32>
      tpu.vector_store %arg11[%44, %c0_25], %32 {strides = array<i32>} : memref<32x128xf32, #tpu.memory_space<vmem>>, vector<16x128xf32>,
    } else {
    }
    %c2_i32 = arith.constant 2 : i32
    %13 = arith.cmpi eq, %arg0, %c2_i32 : i32
    %14 = arith.extui %13 : i1 to i32
    %c0_i32_5 = arith.constant 0 : i32
    %15 = arith.cmpi ne, %14, %c0_i32_5 : i32
    scf.if %15 {
      %c0_i32_6 = arith.constant 0 : i32
      %16 = arith.cmpi eq, %arg1, %c0_i32_6 : i32
      %17 = arith.extui %16 : i1 to i32
      %c0_i32_7 = arith.constant 0 : i32
      %18 = arith.cmpi ne, %17, %c0_i32_7 : i32
      scf.if %18 {
        %c0_14 = arith.constant 0 : index
        %c0_15 = arith.constant 0 : index
        %28 = vector.load %arg14[%c0_14, %c0_15] : memref<1x128xf32, #tpu.memory_space<vmem>>, vector<1x128xf32>
        %cst = arith.constant 3.125000e-02 : f32
        %29 = vector.broadcast %cst : f32 to vector<1x128xf32>
        %30 = arith.mulf %28, %29 : vector<1x128xf32>
        %c0_16 = arith.constant 0 : index
        %c0_17 = arith.constant 0 : index
        %31 = vector.load %arg15[%c0_16, %c0_17] : memref<1x128xf32, #tpu.memory_space<vmem>>, vector<1x128xf32>
        %cst_18 = arith.constant 3.125000e-02 : f32
        %32 = vector.broadcast %cst_18 : f32 to vector<1x128xf32>
        %33 = arith.mulf %31, %32 : vector<1x128xf32>
        %34 = arith.mulf %30, %30 : vector<1x128xf32>
        %35 = arith.subf %33, %34 : vector<1x128xf32>
        %cst_19 = arith.constant 0.000000e+00 : f32
        %36 = vector.broadcast %cst_19 : f32 to vector<1x128xf32>
        %37 = arith.maximumf %35, %36 : vector<1x128xf32>
        %c0_20 = arith.constant 0 : index
        %c0_21 = arith.constant 0 : index
        %38 = vector.load %arg7[%c0_20, %c0_21] : memref<1x128xf32, #tpu.memory_space<vmem>>, vector<1x128xf32>
        %cst_22 = arith.constant 9.99999974E-6 : f32
        %39 = vector.broadcast %cst_22 : f32 to vector<1x128xf32>
        %40 = arith.addf %37, %39 : vector<1x128xf32>
        %41 = math.rsqrt %40 : vector<1x128xf32>
        %42 = arith.mulf %38, %41 : vector<1x128xf32>
        %c0_23 = arith.constant 0 : index
        %c0_24 = arith.constant 0 : index
        %43 = vector.load %arg18[%c0_23, %c0_24] : memref<1x128xf32, #tpu.memory_space<vmem>>, vector<1x128xf32>
        tpu.vector_store %arg18[%c0_23, %c0_24], %42 {strides = array<i32>} : memref<1x128xf32, #tpu.memory_space<vmem>>, vector<1x128xf32>,
        %c0_25 = arith.constant 0 : index
        %c0_26 = arith.constant 0 : index
        %44 = vector.load %arg8[%c0_25, %c0_26] : memref<1x128xf32, #tpu.memory_space<vmem>>, vector<1x128xf32>
        %45 = arith.mulf %30, %42 : vector<1x128xf32>
        %46 = arith.subf %44, %45 : vector<1x128xf32>
        %c0_27 = arith.constant 0 : index
        %c0_28 = arith.constant 0 : index
        %47 = vector.load %arg19[%c0_27, %c0_28] : memref<1x128xf32, #tpu.memory_space<vmem>>, vector<1x128xf32>
        tpu.vector_store %arg19[%c0_27, %c0_28], %46 {strides = array<i32>} : memref<1x128xf32, #tpu.memory_space<vmem>>, vector<1x128xf32>,
      } else {
      }
      %19 = arith.index_cast %1 : i32 to index
      %c0 = arith.constant 0 : index
      %20 = vector.load %arg11[%19, %c0] : memref<32x128xf32, #tpu.memory_space<vmem>>, vector<16x128xf32>
      %c0_8 = arith.constant 0 : index
      %c0_9 = arith.constant 0 : index
      %21 = vector.load %arg18[%c0_8, %c0_9] : memref<1x128xf32, #tpu.memory_space<vmem>>, vector<1x128xf32>
      %22 = vector.broadcast %21 : vector<1x128xf32> to vector<16x128xf32>
      %23 = arith.mulf %20, %22 : vector<16x128xf32>
      %c0_10 = arith.constant 0 : index
      %c0_11 = arith.constant 0 : index
      %24 = vector.load %arg19[%c0_10, %c0_11] : memref<1x128xf32, #tpu.memory_space<vmem>>, vector<1x128xf32>
      %25 = vector.broadcast %24 : vector<1x128xf32> to vector<16x128xf32>
      %26 = arith.addf %23, %25 : vector<16x128xf32>
      %c0_12 = arith.constant 0 : index
      %c0_13 = arith.constant 0 : index
      %27 = vector.load %arg9[%c0_12, %c0_13] : memref<16x128xf32, #tpu.memory_space<vmem>>, vector<16x128xf32>
      tpu.vector_store %arg9[%c0_12, %c0_13], %26 {strides = array<i32>} : memref<16x128xf32, #tpu.memory_space<vmem>>, vector<16x128xf32>,
    } else {
    }
    return
  }
  func.func @transform_0(%arg0: i32, %arg1: i32) -> (i32, i32) {
    %c0_i32 = arith.constant 0 : i32
    %0 = arith.cmpi eq, %arg0, %c0_i32 : i32
    %c1_i32 = arith.constant 1 : i32
    %1 = arith.select %0, %arg1, %c1_i32 : i32
    %c0_i32_0 = arith.constant 0 : i32
    %c0_i32_1 = arith.constant 0 : i32
    return %1, %c0_i32_0 : i32, i32
  }
  func.func @transform_1(%arg0: i32, %arg1: i32) -> (i32, i32) {
    %c0_i32 = arith.constant 0 : i32
    %c0_i32_0 = arith.constant 0 : i32
    %c0_i32_1 = arith.constant 0 : i32
    return %c0_i32, %c0_i32_0 : i32, i32
  }
  func.func @transform_2(%arg0: i32, %arg1: i32) -> (i32, i32) {
    %c0_i32 = arith.constant 0 : i32
    %c0_i32_0 = arith.constant 0 : i32
    %c0_i32_1 = arith.constant 0 : i32
    return %c0_i32, %c0_i32_0 : i32, i32
  }
  func.func @transform_3(%arg0: i32, %arg1: i32) -> (i32, i32) {
    %c0_i32 = arith.constant 0 : i32
    %c0_i32_0 = arith.constant 0 : i32
    %c0_i32_1 = arith.constant 0 : i32
    return %c0_i32, %c0_i32_0 : i32, i32
  }
  func.func @transform_4(%arg0: i32, %arg1: i32) -> (i32, i32) {
    %c0_i32 = arith.constant 0 : i32
    %c0_i32_0 = arith.constant 0 : i32
    %c0_i32_1 = arith.constant 0 : i32
    return %c0_i32, %c0_i32_0 : i32, i32
  }
  func.func @transform_5(%arg0: i32, %arg1: i32) -> (i32, i32) {
    %c0_i32 = arith.constant 0 : i32
    %c0_i32_0 = arith.constant 0 : i32
    %c0_i32_1 = arith.constant 0 : i32
    return %c0_i32, %c0_i32_0 : i32, i32
  }
  func.func @transform_6(%arg0: i32, %arg1: i32) -> (i32, i32) {
    %c0_i32 = arith.constant 0 : i32
    %c0_i32_0 = arith.constant 0 : i32
    %c0_i32_1 = arith.constant 0 : i32
    return %c0_i32, %c0_i32_0 : i32, i32
  }
  func.func @transform_7(%arg0: i32, %arg1: i32) -> (i32, i32) {
    %c2_i32 = arith.constant 2 : i32
    %0 = arith.cmpi eq, %arg0, %c2_i32 : i32
    %c0_i32 = arith.constant 0 : i32
    %1 = arith.select %0, %arg1, %c0_i32 : i32
    %c0_i32_0 = arith.constant 0 : i32
    %c0_i32_1 = arith.constant 0 : i32
    return %1, %c0_i32_0 : i32, i32
  }
}

</mosaic_0001>

<bundles_post_ra>
// kernel: tpu_custom_call.1
= control target key start
LH: loop header
LB: loop body
LE: loop exit
PB: predicated region body
PF: predicated region fallthrough
CT: control target
= control target key end

     0   :  { %s2015_s0 = inlined_call_operand.hbm [shape: bf16[32,32], index: 0, kind: input, shape index: {}]   ;;  %s2016_s1 = inlined_call_operand.hbm [shape: bf16[32,128], index: 1, kind: input, shape index: {}]   ;;  %s2017_s2 = inlined_call_operand.hbm [shape: f32[1,128], index: 2, kind: input, shape index: {}]   ;;  %s2018_s3 = inlined_call_operand.hbm [shape: f32[1,128], index: 3, kind: input, shape index: {}]   ;;  %s2019_s4 = inlined_call_operand.hbm [shape: bf16[128,128], index: 4, kind: input, shape index: {}]   ;;  %s2020_s5 = inlined_call_operand.hbm [shape: f32[1,128], index: 5, kind: input, shape index: {}]   ;;  %s2021_s6 = inlined_call_operand.hbm [shape: f32[1,128], index: 6, kind: input, shape index: {}]   ;;  %s2022_s7 = inlined_call_operand.hbm [shape: f32[32,128], index: 7, kind: output, shape index: {}]  }
   0x1   :  { %2035 = sst [smem:[#allocation34_spill]] %s2015_s0 }
   0x2   :  { %2036 = sst [smem:[#allocation35_spill]] %s2016_s1 }
   0x3   :  { %2037 = sst [smem:[#allocation36_spill]] %s2017_s2 }
   0x4   :  { %2038 = sst [smem:[#allocation37_spill]] %s2018_s3 }
   0x5   :  { %2039 = sst [smem:[#allocation38_spill]] %s2019_s4 }
   0x6   :  { %2040 = sst [smem:[#allocation39_spill]] %s2022_s7 }
   0x7   :  { %12 = vsyncpa [#allocation13], 0 }
   0x8   :  { %14 = vsyncpa [#allocation13 + $0x1], 0 }
   0x9   :  { %15 = vsyncpa [#allocation16], 0 }
   0xa   :  { %16 = vsyncpa [#allocation19], 0 }
   0xb   :  { %17 = vsyncpa [#allocation22], 0 }
   0xc   :  { %18 = vsyncpa [#allocation14], 0 }
   0xd   :  { %20 = vsyncpa [#allocation14 + $0x1], 0  ;;  %s1578_s24 = smov 0   ;;  %s1580_s25 = smov 0  }
   0xe   :  { %s1582_s26 = smov 0   ;;  %s1584_s27 = smov 0  }
   0xf   :  { %s1586_s28 = smov 0   ;;  %s1588_s29 = smov 0  }
  0x10   :  { %s1590_s30 = smov 0   ;;  %s1592_s8 = smov 0  }
  0x11   :  { %s1594_s9 = smov 0   ;;  %s1596_s10 = smov 0  }
  0x12   :  { %s1598_s11 = smov 0  }
  0x13 LB: > { %2041 = sst [smem:[#allocation30_spill]] %s1479_s24  ;;  %s2023_s12 = sadd.s32 4294967295, %s1519_s11   ;;  %s1519_s11 = sphi %s1598_s11, %s26_s11   ;;  %s1515_s10 = sphi %s1596_s10, %s2090_s10   ;;  %s1511_s9 = sphi %s1594_s9, %s2089_s9   ;;  %s1507_s8 = sphi %s1592_s8, %s2088_s8   ;;  %s1503_s30 = sphi %s1590_s30, %s2087_s30   ;;  %s1499_s29 = sphi %s1588_s29, %s2086_s29   ;;  %s1495_s28 = sphi %s1586_s28, %s2085_s28   ;;  %s1491_s27 = sphi %s1584_s27, %s2084_s27   ;;  %s1487_s26 = sphi %s1582_s26, %s2083_s26   ;;  %s1483_s25 = sphi %s1580_s25, %s2082_s25   ;;  %s1479_s24 = sphi %s1578_s24, %s2081_s24  }
  0x14   : > { %2042 = sst [smem:[#allocation31_spill]] %s1503_s30  ;;  %p909_p0 = scmp.ge.s32.totalorder %s1519_s11, 1 }
  0x15   : > { %2043 = sst [smem:[#allocation32_spill]] %s1507_s8  ;;  %p1637_p1 = scmp.eq.s32.totalorder %s2023_s12, 0 }
  0x16   : > { %p229_p2 = scmp.lt.s32.totalorder %s1519_s11, 7  ;;  %s1521_s15 = smov [#allocation15]  }
  0x17   : > { %s2044_s13 = scalar_select %p1637_p1, 1, 0 }
  0x18   : > { %p1642_p3 = pnand %p909_p0, %p229_p2  ;;  %s241_s16 = sshll.u32 %s1521_s15, 4  ;;  %s1646_s16 = int_to_ptr.vmem [resolvable:$true] %s241_s16 }
  0x19   : > { %s1522_s18 = smov [#allocation18]   ;;  %s1523_s20 = smov [#allocation21]  }
  0x1a   : > { %s2045_s14 = scalar_select %p1642_p3, 1, 0 }
  0x1b   : > { %p1028_p4 = pneg %p1642_p3  ;;  %s266_s19 = sshll.u32 %s1522_s18, 4  ;;  %s1656_s19 = int_to_ptr.vmem [resolvable:$true] %s266_s19 }
  0x1c   : > { %2046 = sst [smem:[#allocation33_spill]] %s2045_s14  ;;  %s1658_s21 = sshll.u32 %s1523_s20, 4  ;;  %s291_s21 = int_to_ptr.vmem [resolvable:$true] %s1658_s21 }
  0x1d   : > { %p1652_p5 = pnand %p1028_p4, %p1637_p1  ;;  %s2048_s1 = sld [smem:[#allocation35_spill]] }
  0x1f   : > { %p1668_p7 = pneg %p1652_p5 }
  0x23   : > { %s1187_s15 = scalar_lea.hbm %s2048_s1, 256 }
  0x24   : > { %p1188_p6 = scmp.ne.s32.totalorder %s2048_s1, %s1187_s15  ;;  %p1194_p10 = scmp.lt.u32.totalorder %s1187_s15, %s2048_s1 }
  0x26   : > { %p1190_p8 = pnand %p1668_p7, %p1188_p6 }
  0x28   : > { %p1191_p9 = pneg %p1190_p8 }
  0x2a   : > { %p1196_p11 = pnand %p1194_p10, %p1191_p9 }
  0x2c   : > { %1199 = shalt.err (!%p1196_p11)
}
  0x2d   : > { %s1200_s7 = scalar_lea.vmem %s1646_s16, 256  ;;  %p1208_p2 = scmp.lt.s32.totalorder %s1646_s16, %s1646_s16 }
  0x2e   : > { %p1201_p12 = scmp.ne.s32.totalorder %s1646_s16, %s1200_s7  ;;  %p1209_p4 = scmp.lt.s32.totalorder %s1200_s7, %s1200_s7 }
  0x30   : > { %p1203_p13 = pnand %p1201_p12, %p1668_p7  ;;  %p1210_p6 = por %p1209_p4, %p1208_p2 }
  0x32   : > { %p1204_p0 = pneg %p1203_p13 }
  0x34   : > { %p1211_p8 = pnand %p1210_p6, %p1204_p0 }
  0x36   : > { %1214 = shalt.err (!%p1211_p8)
}
  0x37   : > { %s2031_s12 = smov 64   ;;  %s2033_s22 = smov 4  }
  0x38   : > { %1031 = dma.hbm_to_vmem [thread:$0]  (!%p1652_p5), %s2048_s1, 256, %s1646_s16, [#allocation16], %s2031_s12, %s2031_s12, %s2033_s22  }
  0x39   : > { %s2050_s3 = sld [smem:[#allocation37_spill]] }
  0x3f   : > { %s1215_s7 = scalar_lea.hbm %s2050_s3, 16 }
  0x40   : > { %p1216_p9 = scmp.ne.s32.totalorder %s2050_s3, %s1215_s7  ;;  %p1222_p12 = scmp.lt.u32.totalorder %s1215_s7, %s2050_s3 }
  0x42   : > { %p1218_p10 = pnand %p1216_p9, %p1668_p7 }
  0x44   : > { %p1219_p11 = pneg %p1218_p10 }
  0x46   : > { %p1224_p13 = pnand %p1222_p12, %p1219_p11 }
  0x48   : > { %1227 = shalt.err (!%p1224_p13)
}
  0x49   : > { %s1228_s16 = scalar_lea.vmem %s1656_s19, 16  ;;  %s1235_s30 = scalar_lea.vmem %s1656_s19, 32 }
  0x4a   : > { %p1229_p0 = scmp.ne.s32.totalorder %s1656_s19, %s1228_s16  ;;  %p1236_p6 = scmp.lt.s32.totalorder %s1656_s19, %s1656_s19 }
  0x4b   : > { %p1237_p8 = scmp.lt.s32.totalorder %s1235_s30, %s1228_s16 }
  0x4c   : > { %p1231_p2 = pnand %p1229_p0, %p1668_p7 }
  0x4d   : > { %p1238_p9 = por %p1237_p8, %p1236_p6 }
  0x4e   : > { %p1232_p4 = pneg %p1231_p2 }
  0x50   : > { %p1239_p10 = pnand %p1238_p9, %p1232_p4 }
  0x52   : > { %1242 = shalt.err (!%p1239_p10)
}
  0x53   : > { %1037 = dma.hbm_to_vmem [thread:$0]  (!%p1652_p5), %s2050_s3, 16, %s1656_s19, [#allocation19]  }
  0x54   : > { %s1243_s15 = scalar_lea.hbm %s2020_s5, 16 }
  0x55   : > { %p1244_p11 = scmp.ne.s32.totalorder %s2020_s5, %s1243_s15  ;;  %p1250_p0 = scmp.lt.u32.totalorder %s1243_s15, %s2020_s5 }
  0x57   : > { %p1246_p12 = pnand %p1244_p11, %p1668_p7 }
  0x59   : > { %p1247_p13 = pneg %p1246_p12 }
  0x5b   : > { %p1252_p2 = pnand %p1250_p0, %p1247_p13 }
  0x5d   : > { %1255 = shalt.err (!%p1252_p2)
}
  0x5e   : > { %s1256_s30 = scalar_lea.vmem %s291_s21, 16  ;;  %s1263_s19 = scalar_lea.vmem %s291_s21, 32 }
  0x5f   : > { %p1257_p4 = scmp.ne.s32.totalorder %s291_s21, %s1256_s30  ;;  %p1264_p9 = scmp.lt.s32.totalorder %s291_s21, %s291_s21 }
  0x60   : > { %p1265_p10 = scmp.lt.s32.totalorder %s1263_s19, %s1256_s30 }
  0x61   : > { %p1259_p6 = pnand %p1257_p4, %p1668_p7 }
  0x62   : > { %p1266_p3 = por %p1265_p10, %p1264_p9 }
  0x63   : > { %p1260_p8 = pneg %p1259_p6 }
  0x65   : > { %p1267_p1 = pnand %p1266_p3, %p1260_p8 }
  0x67   : > { %1270 = shalt.err (!%p1267_p1)
}
  0x68   : > { %1043 = dma.hbm_to_vmem [thread:$0]  (!%p1652_p5), %s2020_s5, 16, %s291_s21, [#allocation22]  }
  0x69   : > { %s1526_s14 = smov [#allocation17]   ;;  %s1527_s15 = smov [#allocation20]  }
  0x6a   : > { %s255_s23 = sshll.u32 %s1526_s14, 4  ;;  %s276_s18 = sshll.u32 %s1527_s15, 4  ;;  %s256_s23 = int_to_ptr.vmem [resolvable:$true] %s255_s23  ;;  %s277_s18 = int_to_ptr.vmem [resolvable:$true] %s276_s18 }
  0x6b   : > { %s2051_s2 = sld [smem:[#allocation36_spill]] }
  0x71   : > { %s1271_s16 = scalar_lea.hbm %s2051_s2, 16 }
  0x72   : > { %p1272_p1 = scmp.ne.s32.totalorder %s2051_s2, %s1271_s16  ;;  %p1278_p12 = scmp.lt.u32.totalorder %s1271_s16, %s2051_s2 }
  0x74   : > { %p1274_p3 = pnand %p1272_p1, %p1668_p7 }
  0x76   : > { %p1275_p11 = pneg %p1274_p3 }
  0x78   : > { %p1280_p13 = pnand %p1278_p12, %p1275_p11 }
  0x7a   : > { %1283 = shalt.err (!%p1280_p13)
}
  0x7b   : > { %s1284_s21 = scalar_lea.vmem %s256_s23, 16  ;;  %s1291_s24 = scalar_lea.vmem %s256_s23, 32 }
  0x7c   : > { %p1285_p0 = scmp.ne.s32.totalorder %s256_s23, %s1284_s21  ;;  %p1292_p6 = scmp.lt.s32.totalorder %s256_s23, %s256_s23 }
  0x7d   : > { %p1293_p8 = scmp.lt.s32.totalorder %s1291_s24, %s1284_s21 }
  0x7e   : > { %p1287_p2 = pnand %p1285_p0, %p1668_p7 }
  0x7f   : > { %p1294_p9 = por %p1293_p8, %p1292_p6 }
  0x80   : > { %p1288_p4 = pneg %p1287_p2 }
  0x82   : > { %p1295_p10 = pnand %p1294_p9, %p1288_p4 }
  0x84   : > { %1298 = shalt.err (!%p1295_p10)
}
  0x85   : > { %1034 = dma.hbm_to_vmem [thread:$0]  (!%p1652_p5), %s2051_s2, 16, %s256_s23, [#allocation16]  }
  0x86   : > { %s2052_s4 = sld [smem:[#allocation38_spill]] }
  0x8c   : > { %s1299_s7 = scalar_lea.hbm %s2052_s4, 1024 }
  0x8d   : > { %p1300_p1 = scmp.ne.s32.totalorder %s2052_s4, %s1299_s7  ;;  %p1306_p12 = scmp.lt.u32.totalorder %s1299_s7, %s2052_s4 }
  0x8f   : > { %p1302_p3 = pnand %p1300_p1, %p1668_p7 }
  0x91   : > { %p1303_p11 = pneg %p1302_p3 }
  0x93   : > { %p1308_p13 = pnand %p1306_p12, %p1303_p11 }
  0x95   : > { %1311 = shalt.err (!%p1308_p13)
}
  0x96   : > { %s1312_s21 = scalar_lea.vmem %s277_s18, 1024  ;;  %p1320_p6 = scmp.lt.s32.totalorder %s277_s18, %s277_s18 }
  0x97   : > { %p1313_p0 = scmp.ne.s32.totalorder %s277_s18, %s1312_s21  ;;  %p1321_p8 = scmp.lt.s32.totalorder %s1312_s21, %s1312_s21 }
  0x99   : > { %p1315_p2 = pnand %p1313_p0, %p1668_p7  ;;  %p1322_p9 = por %p1321_p8, %p1320_p6 }
  0x9b   : > { %p1316_p4 = pneg %p1315_p2 }
  0x9d   : > { %p1323_p10 = pnand %p1322_p9, %p1316_p4 }
  0x9f   : > { %1326 = shalt.err (!%p1323_p10)
}
  0xa0   : > { %s2053_s23 = smov 64   ;;  %s1528_s15 = smov [#allocation23]  }
  0xa1   : > { %1040 = dma.hbm_to_vmem [thread:$0]  (!%p1652_p5), %s2052_s4, 1024, %s277_s18, [#allocation19], %s2053_s23, %s2053_s23, %s2033_s22  }
  0xa2   : > { %s301_s12 = sshll.u32 %s1528_s15, 4  ;;  %s1327_s16 = scalar_lea.hbm %s2021_s6, 16  ;;  %s302_s12 = int_to_ptr.vmem [resolvable:$true] %s301_s12 }
  0xa3   : > { %p1328_p1 = scmp.ne.s32.totalorder %s2021_s6, %s1327_s16  ;;  %p1334_p12 = scmp.lt.u32.totalorder %s1327_s16, %s2021_s6 }
  0xa5   : > { %p1330_p3 = pnand %p1328_p1, %p1668_p7 }
  0xa7   : > { %p1331_p11 = pneg %p1330_p3 }
  0xa9   : > { %p1336_p13 = pnand %p1334_p12, %p1331_p11 }
  0xab   : > { %1339 = shalt.err (!%p1336_p13)
}
  0xac   : > { %s1340_s18 = scalar_lea.vmem %s302_s12, 16  ;;  %s1347_s24 = scalar_lea.vmem %s302_s12, 32 }
  0xad   : > { %p1341_p0 = scmp.ne.s32.totalorder %s302_s12, %s1340_s18  ;;  %p1348_p6 = scmp.lt.s32.totalorder %s302_s12, %s302_s12 }
  0xae   : > { %p1349_p8 = scmp.lt.s32.totalorder %s1347_s24, %s1340_s18 }
  0xaf   : > { %p1343_p2 = pnand %p1341_p0, %p1668_p7 }
  0xb0   : > { %p1350_p9 = por %p1349_p8, %p1348_p6 }
  0xb1   : > { %p1344_p4 = pneg %p1343_p2 }
  0xb3   : > { %p1351_p10 = pnand %p1350_p9, %p1344_p4 }
  0xb5   : > { %1354 = shalt.err (!%p1351_p10)
}
  0xb6   : > { %1046 = dma.hbm_to_vmem [thread:$0]  (!%p1652_p5), %s2021_s6, 16, %s302_s12, [#allocation22]  }
  0xb7   : > { %s35_s20 = sadd.s32 1, %s1511_s9  ;;  %s38_s17 = sadd.s32 1, %s1515_s10 }
  0xb8   : > { %p36_p7 = scmp.ge.s32.totalorder %s35_s20, 2  ;;  %p42_p1 = scmp.eq.s32.totalorder %s1515_s10, 0 }
  0xb9   : > { %s49_s7 = sadd.s32 1, %s1499_s29  ;;  %p56_p3 = scmp.ne.s32.totalorder %s1499_s29, %s1495_s28 }
  0xba   : > { %s2092_s20 = smov (%p36_p7, %s35_s20), 0  ;;  %s2094_s17 = smov (!%p36_p7, %s38_s17), %s1515_s10 }
  0xbb   : > { %s1801_s16 = scalar_select %p42_p1, %s1511_s9, 1 }
  0xbc   : > { %p40_p5 = scmp.ge.s32.totalorder %s2094_s17, 3  ;;  %p57_p11 = scmp.eq.s32.totalorder %s1519_s11, 0 }
  0xbd   : > { %p62_p12 = scmp.ne.s32.totalorder %s1495_s28, %s1491_s27  ;;  %p2055_p0 = scmp.ne.s32.totalorder %s2044_s13, 0 }
  0xbe   : > { %s2096_s17 = smov (%p40_p5, %s2094_s17), 0  ;;  %p1810_p13 = por %p57_p11, %p56_p3 }
  0xbf   : > { %p1816_p2 = por %p2055_p0, %p62_p12  ;;  %s2057_s19 = sld [smem:[#allocation30_spill]] }
  0xc0   : > { %p44_p4 = scmp.eq.s32.totalorder %s2096_s17, 0  ;;  %p198_p6 = scmp.eq.s32.totalorder %s1515_s10, 2 }
  0xc1   : > { %p200_p8 = scmp.eq.s32.totalorder %s2096_s17, 2  ;;  %s205_s27 = sadd.s32 1, %s1487_s26 }
  0xc2   : > { %s45_s0 = scalar_select %p44_p4, %s2092_s20, 1 }
  0xc3   : > { %s199_s21 = scalar_select %p198_p6, %s1511_s9, 0 }
  0xc4   : > { %s46_s18 = ssub.s32 %s1801_s16, %s45_s0  ;;  %p215_p9 = scmp.ne.s32.totalorder %s1487_s26, %s1483_s25 }
  0xc5   : > { %p47_p10 = scmp.eq.s32.totalorder %s46_s18, 0  ;;  %s2058_s24 = sadd.s32 4294967295, %s1519_s11  }
  0xc6   : > { %p216_p7 = scmp.eq.s32.totalorder %s2058_s24, 5  ;;  %p221_p3 = scmp.ne.s32.totalorder %s1483_s25, %s2057_s19 }
  0xc7   : > { %s201_s14 = scalar_select %p200_p8, %s2092_s20, 0 }
  0xc8   : > { %s1833_s15 = scalar_select %p47_p10, %s1499_s29, %s49_s7  }
  0xc9   : > { %s202_s22 = ssub.s32 %s199_s21, %s201_s14  ;;  %p1835_p1 = por %p216_p7, %p215_p9 }
  0xca   : > { %p203_p5 = scmp.eq.s32.totalorder %s202_s22, 0  ;;  %s2060_s1 = sadd.s32 4294967294, %s1519_s11  }
  0xcb   : > { %s2059_s8 = scalar_select %p1835_p1, 1, 0 }
  0xcc   : > { %p222_p11 = scmp.eq.s32.totalorder %s2060_s1, 5  ;;  %p1061_p12 = scmp.lt.s32.totalorder %s1519_s11, 6 }
  0xcd   : > { %s1845_s0 = scalar_select %p203_p5, %s1487_s26, %s205_s27  }
  0xce   : > { %p1847_p0 = por %p222_p11, %p221_p3  ;;  %s312_s24 = sand.u32 1, %s1499_s29  }
  0xcf   : > { %s917_s7 = sshll.u32 %s312_s24, 3  ;;  %s958_s2 = sshll.u32 %s1801_s16, 7 }
  0xd0   : > { %s2061_s18 = scalar_select %p1847_p0, 1, 0 }
  0xd1   : > { %s2062_s14 = sld [smem:[#allocation34_spill]]  ;;  %s316_s1 = scalar_lea.vmem [#allocation12], %s917_s7 }
  0xd2   : > { %s325_s22 = sshll.u32 %s316_s1, 4  ;;  %p1862_p4 = pnand %p1061_p12, %p1810_p13  ;;  %s1858_s22 = int_to_ptr.vmem [resolvable:$true] %s325_s22 }
  0xd3   : > { %s1866_s16 = scalar_lea.sflag [#allocation13], %s312_s24 }
  0xd4   : > { %p1357_p8 = pneg %p1862_p4 }
  0xd7   : > { %s1856_s4 = scalar_lea.hbm %s2062_s14, %s958_s2  ;;  %s1360_s12 = scalar_lea.hbm %s2062_s14, 256 }
  0xd8   : > { %s1355_s3 = scalar_lea.hbm %s1856_s4, 128  ;;  %p1361_p13 = scmp.lt.u32.totalorder %s1856_s4, %s2062_s14 }
  0xd9   : > { %p1356_p6 = scmp.ne.s32.totalorder %s1856_s4, %s1355_s3  ;;  %p1362_p7 = scmp.lt.u32.totalorder %s1360_s12, %s1355_s3 }
  0xda   : > { %p1364_p3 = scmp.lt.u32.totalorder %s1355_s3, %s1856_s4 }
  0xdb   : > { %p1358_p9 = pnand %p1357_p8, %p1356_p6  ;;  %p1363_p5 = por %p1362_p7, %p1361_p13 }
  0xdd   : > { %p1359_p10 = pneg %p1358_p9  ;;  %p1365_p11 = por %p1364_p3, %p1363_p5 }
  0xdf   : > { %p1366_p12 = pnand %p1365_p11, %p1359_p10 }
  0xe1   : > { %1369 = shalt.err (!%p1366_p12)
}
  0xe2   : > { %s1370_s24 = scalar_lea.vmem %s1858_s22, 128  ;;  %s1529_s1 = smov [#allocation12]  }
  0xe3   : > { %p1371_p6 = scmp.ne.s32.totalorder %s1858_s22, %s1370_s24  ;;  %s1375_s2 = sshll.u32 %s1529_s1, 4  ;;  %s1376_s2 = int_to_ptr.vmem [resolvable:$false] %s1375_s2 }
  0xe4   : > { %s1377_s27 = scalar_lea.vmem %s1376_s2, 256  ;;  %p1378_p1 = scmp.lt.s32.totalorder %s1858_s22, %s1376_s2 }
  0xe5   : > { %p1373_p9 = pnand %p1371_p6, %p1357_p8  ;;  %p1379_p13 = scmp.lt.s32.totalorder %s1377_s27, %s1370_s24 }
  0xe7   : > { %p1374_p0 = pneg %p1373_p9  ;;  %p1380_p7 = por %p1379_p13, %p1378_p1 }
  0xe9   : > { %p1381_p5 = pnand %p1380_p7, %p1374_p0 }
  0xeb   : > { %1384 = shalt.err (!%p1381_p5)
}
  0xec   : > { %s2064_s3 = smov 4   ;;  %s2065_s12 = sld [smem:[#allocation33_spill]] }
  0xed   : > { %1050 = dma.hbm_to_vmem [thread:$0]  (!%p1862_p4), %s1856_s4, 128, %s1858_s22, %s1866_s16, %s2053_s23, %s2053_s23, %s2064_s3  }
  0xf2   : > { %p2066_p8 = scmp.ne.s32.totalorder %s2065_s12, 0 }
  0xf3   : > { %s339_s7 = sand.u32 (!%p2066_p8), 1, %s1495_s28  }
  0xf4   : > { %337 = sbr.rel (%p2066_p8) target bundleno = 918 (0x396), region = 48  ;;  %s1900_s21 = sshll.u32 (!%p2066_p8), %s339_s7, 3 }
  0xf5   : > { %s340_s24 = scalar_lea.sflag (!%p2066_p8), [#allocation13], %s339_s7  ;;  %s343_s1 = scalar_lea.vmem (!%p2066_p8), [#allocation12], %s1900_s21 }
  0xfb   : > { %1458 = dma.done.wait (%p1816_p2), %s340_s24, 128  }
  0xfc   : > { %1460 = vsyncadd (%p1816_p2), %s340_s24, 4294967168  ;;  %p2067_p1 = scmp.ne.s32.totalorder %s2044_s13, 0 }
  0xfe   : > { %1462 = dma.done.wait (%p2067_p1), [#allocation16], 272  }
  0xff   : > { %1464 = vsyncadd (%p2067_p1), [#allocation16], 4294967024 }
 0x100   : > { %1466 = dma.done.wait (%p2067_p1), [#allocation19], 1040  }
 0x101   : > { %1468 = vsyncadd (%p2067_p1), [#allocation19], 4294966256 }
 0x102   : > { %1470 = dma.done.wait (%p2067_p1), [#allocation22], 32  }
 0x103   : > { %1472 = vsyncadd (%p2067_p1), [#allocation22], 4294967264  ;;  %s2068_s4 = sld [smem:[#allocation31_spill]]  ;;  %s2069_s23 = sld [smem:[#allocation32_spill]] }
 0x104   : > { %s395_s30 = sand.u32 1, %s1483_s25  }
 0x105   : > { %s928_s19 = sshll.u32 %s395_s30, 4 }
 0x106   : > { %s1927_s16 = scalar_lea.vmem [#allocation24], %s928_s19 }
 0x109   : > { %s1921_s22 = sshll.u32 %s2068_s4, 4  ;;  %p406_p2 = scmp.eq.s32.totalorder %s2069_s23, 0 }
 0x10a   : > { %p407_p0 = scmp.eq.s32.totalorder %s2068_s4, 0 }
 0x10c   : > { %p408_p4 = pnand %p407_p0, %p406_p2 }
 0x10d   : > { %v1530_v0 = vmov (!%p408_p4), 0.0  }
 0x10e   : > { %411 = sbr.rel (%p408_p4) target bundleno = 277 (0x115), region = 80  ;;  %412 = vst [vmem:[#allocation4] sm:$0x1] (!%p408_p4), %v1530_v0  ;;  %413 = vst [vmem:[#allocation5] sm:$0x1] (!%p408_p4), %v1530_v0 }
 0x10f   : > { %414 = vst [vmem:[#allocation6] sm:$0x1] (!%p408_p4), %v1530_v0  ;;  %415 = vst [vmem:[#allocation7] sm:$0x1] (!%p408_p4), %v1530_v0 }
 0x115 PF: > { %s2070_s13 = sld [smem:[#allocation32_spill]] }
 0x11b   : > { %p930_p10 = scmp.ne.s32.totalorder %s2070_s13, 0 }
 0x11c   : > { %v1172_v1 = vld [vmem:[#allocation15] sm:$0xff] (!%p930_p10)   ;;  %v1531_v2 = vmov (!%p930_p10), 0.0   ;;  %v1173_v3 = vld [vmem:[#allocation15 + $0x8] sm:$0xff] (!%p930_p10)   ;;  %vm1532_vm0 = vmmov (!%p930_p10), 0   ;;  %v1174_v4 = vld [vmem:[%s343_s1] sm:$0xff] (!%p930_p10)   ;;  %vm442_vm1 = vcmask (!%p930_p10), 261120  }
 0x11d   : > { %418 = sbr.rel (%p930_p10) target bundleno = 526 (0x20e), region = 84  ;;  %972 = vmatprep.subr.bf16.mxu0 (!%p930_p10), %v1531_v2  ;;  %976 = vmatprep.mubr.msk.bf16.mxu0 (!%p930_p10), %vm1532_vm0, %v1531_v2  ;;  %s510_s2 = sshra.s32 (!%p930_p10), %s1921_s22, 4  ;;  %v487_v23 = vld [vmem:[#allocation4] sm:$0x1] (!%p930_p10)  ;;  %v497_v26 = vld [vmem:[#allocation5] sm:$0x1] (!%p930_p10) }
 0x11e   : > { %973 = vmatpush3.bf16.msra.mxu0 (!%p930_p10), %v1172_v1  ;;  %s935_s27 = sshll.u32 (!%p930_p10), %s510_s2, 3 }
 0x11f   : > { %974 = vmatprep.subr.bf16.mxu0 (!%p930_p10), %v1531_v2  ;;  %s513_s3 = scalar_lea.vmem (!%p930_p10), [#allocation2], %s935_s27 }
 0x122   : > { %975 = vmatpush3.bf16.msra.mxu0 (!%p930_p10), %v1173_v3 }
 0x125   : > { %977 = vmatmul.mubr.msk.bf16.vlgmr.msra.gmra.mrb[0].mxu0 %vm442_vm1, %v1174_v4 }
 0x1f8   : > { %v480_v5 = vpop.f32.mrb[0].mxu0 }
 0x1f9   : > { %v978_v6 = vpop.f32.mrb[1].mxu0  ;;  %v498_v8 = vmul.f32 %v480_v5, %v480_v5 }
 0x1fa   : > { %v483_v7 = vpop.f32.mrb[2].mxu0 }
 0x1fb   : > { %v488_v9 = vadd.f32 %v483_v7, %v480_v5  ;;  %v499_v10 = vmul.f32 %v483_v7, %v483_v7  ;;  %v509_v11 = vpack.c.bf16 %v483_v7, %v480_v5  ;;  %v979_v12 = vpop.f32.mrb[3].mxu0 }
 0x1fd   : > { %v489_v13 = vrot.slane %v488_v9, 4  ;;  %v500_v14 = vadd.f32 %v499_v10, %v498_v8  ;;  %514 = vst [vmem:[%s513_s3] sm:$0xff] %v509_v11 }
 0x1ff   : > { %v490_v15 = vadd.f32 %v489_v13, %v488_v9  ;;  %v501_v16 = vrot.slane %v500_v14, 4 }
 0x201   : > { %v491_v17 = vrot.slane %v490_v15, 2  ;;  %v502_v18 = vadd.f32 %v501_v16, %v500_v14 }
 0x203   : > { %v492_v19 = vadd.f32 %v491_v17, %v490_v15  ;;  %v503_v20 = vrot.slane %v502_v18, 2 }
 0x205   : > { %v493_v21 = vrot.slane %v492_v19, 1  ;;  %v504_v22 = vadd.f32 %v503_v20, %v502_v18 }
 0x207   : > { %v494_v24 = vadd.f32 %v493_v21, %v492_v19  ;;  %v505_v25 = vrot.slane %v504_v22, 1 }
 0x209   : > { %v495_v27 = vadd.f32 %v494_v24, %v487_v23  ;;  %v506_v28 = vadd.f32 %v505_v25, %v504_v22 }
 0x20b   : > { %496 = vst [vmem:[#allocation4] sm:$0x1] %v495_v27  ;;  %v507_v29 = vadd.f32 %v506_v28, %v497_v26 }
 0x20d   : > { %508 = vst [vmem:[#allocation5] sm:$0x1] %v507_v29 }
 0x20e PF: > { %s2071_s12 = sld [smem:[#allocation32_spill]] }
 0x214   : > { %p936_p3 = scmp.ne.s32.totalorder %s2071_s12, 1 }
 0x215   : > { %s2072_s7 = sld [smem:[#allocation31_spill]] (!%p936_p3) }
 0x216   : > { %518 = sbr.rel (%p936_p3) target bundleno = 836 (0x344), region = 88 }
 0x21b   : > { %p937_p11 = scmp.ne.s32.totalorder (!%p936_p3), %s2072_s7, 0 }
 0x21d   : > { %521 = sbr.rel (%p937_p11) target bundleno = 570 (0x23a), region = 92  ;;  %v522_v30 = vld [vmem:[#allocation4] sm:$0x1] (!%p937_p11)  ;;  %v524_v31 = vld [vmem:[#allocation5] sm:$0x1] (!%p937_p11) }
 0x21e   : > { %v523_v32 = vmul.f32 (!%p937_p11), 0.03125, %v522_v30  ;;  %v525_v33 = vmul.f32 (!%p937_p11), 0.03125, %v524_v31  ;;  %v529_v38 = vld [vmem:[#allocation17] sm:$0x1] (!%p937_p11)  ;;  %v534_v41 = vld [vmem:[#allocation18] sm:$0x1] (!%p937_p11) }
 0x220   : > { %v526_v34 = vmul.f32 (!%p937_p11), %v523_v32, %v523_v32 }
 0x222   : > { %v527_v35 = vsub.f32 (!%p937_p11), %v525_v33, %v526_v34 }
 0x224   : > { %v528_v36 = vmax.f32 %v527_v35, 0.0 }
 0x226   : > { %v530_v37 = vadd.f32 1e-05, %v528_v36 }
 0x228   : > { %1175 = vrsqrt.f32 %v530_v37 }
 0x232   : > { %v1176_v39 = vpop.eup %1175 }
 0x233   : > { %v532_v40 = vmul.f32 %v1176_v39, %v529_v38 }
 0x235   : > { %533 = vst [vmem:[#allocation8] sm:$0x1] %v532_v40  ;;  %v535_v42 = vmul.f32 %v532_v40, %v523_v32 }
 0x237   : > { %v536_v43 = vsub.f32 %v534_v41, %v535_v42 }
 0x239   : > { %537 = vst [vmem:[#allocation9] sm:$0x1] %v536_v43 }
 0x23a PF: > { %v1177_v44 = vld [vmem:[#allocation20] sm:$0xff]   ;;  %v1533_v45 = vmov 0.0   ;;  %v1178_v46 = vld [vmem:[#allocation20 + $0x8] sm:$0xff]   ;;  %vm1534_vm2 = vmmov 0   ;;  %s538_s21 = sshra.s32 %s1921_s22, 4  ;;  %v1179_v47 = vld [vmem:[#allocation20 + $0x10] sm:$0xff]  }
 0x23b   : > { %980 = vmatprep.subr.bf16.mxu0 %v1533_v45  ;;  %996 = vmatprep.mubr.msk.bf16.mxu0 %vm1534_vm2, %v1533_v45  ;;  %s938_s24 = sshll.u32 %s538_s21, 3  ;;  %v1180_v48 = vld [vmem:[#allocation20 + $0x18] sm:$0xff]   ;;  %v1181_v52 = vld [vmem:[#allocation20 + $0x20] sm:$0xff]   ;;  %v1182_v56 = vld [vmem:[#allocation20 + $0x28] sm:$0xff]   ;;  %s693_s4 = scalar_lea.vmem [#allocation3], %s1921_s22 }
 0x23c   : > { %981 = vmatpush3.bf16.msra.mxu0 %v1177_v44  ;;  %s541_s1 = scalar_lea.vmem [#allocation2], %s938_s24  ;;  %v939_v53 = vld [vmem:[#allocation8] ss:$0 sm:$0xff]  ;;  %v1183_v60 = vld [vmem:[#allocation20 + $0x30] sm:$0xff]  }
 0x23d   : > { %982 = vmatprep.subr.bf16.mxu0 %v1533_v45  ;;  %v542_v49 = vld [vmem:[%s541_s1] sm:$0xff]  ;;  %v1184_v63 = vld [vmem:[#allocation20 + $0x38] sm:$0xff]   ;;  %v671_v18 = vld [vmem:[#allocation6] sm:$0x1] }
 0x23e   : > { %v543_v50 = vunpack.c.l.bf16 %v542_v49  ;;  %v544_v51 = vunpack.c.h.bf16 %v542_v49  ;;  %v681_v21 = vld [vmem:[#allocation7] sm:$0x1] }
 0x240   : > { %983 = vmatpush3.bf16.msra.mxu0 %v1178_v46  ;;  %v552_v54 = vmul.f32 %v939_v53, %v543_v50  ;;  %v553_v55 = vmul.f32 %v939_v53, %v544_v51  ;;  %v940_v57 = vld [vmem:[#allocation9] ss:$0 sm:$0xff] }
 0x241   : > { %984 = vmatprep.subr.bf16.mxu0 %v1533_v45 }
 0x242   : > { %v561_v58 = vadd.f32 %v940_v57, %v552_v54  ;;  %v562_v59 = vadd.f32 %v940_v57, %v553_v55 }
 0x244   : > { %985 = vmatpush3.bf16.msra.mxu0 %v1179_v47  ;;  %v563_v61 = vmax.f32 %v561_v58, 0.0  ;;  %v564_v62 = vmax.f32 %v562_v59, 0.0 }
 0x245   : > { %986 = vmatprep.subr.bf16.mxu0 %v1533_v45 }
 0x246   : > { %v565_v0 = vpack.c.bf16 %v564_v62, %v563_v61 }
 0x248   : > { %987 = vmatpush3.bf16.msra.mxu0 %v1180_v48 }
 0x249   : > { %988 = vmatprep.subr.bf16.mxu0 %v1533_v45 }
 0x24c   : > { %989 = vmatpush3.bf16.msra.mxu0 %v1181_v52 }
 0x24d   : > { %990 = vmatprep.subr.bf16.mxu0 %v1533_v45 }
 0x250   : > { %991 = vmatpush3.bf16.msra.mxu0 %v1182_v56 }
 0x251   : > { %992 = vmatprep.subr.bf16.mxu0 %v1533_v45 }
 0x254   : > { %993 = vmatpush3.bf16.msra.mxu0 %v1183_v60 }
 0x255   : > { %994 = vmatprep.subr.bf16.mxu0 %v1533_v45 }
 0x258   : > { %995 = vmatpush3.bf16.msra.mxu0 %v1184_v63 }
 0x25b   : > { %997 = vmatmul.mubr.bf16.vlgmr.msra.gmra.mrb[0].mxu0 %v565_v0 }
 0x32e   : > { %v664_v1 = vpop.f32.mrb[0].mxu0 }
 0x32f   : > { %694 = vst [vmem:[%s693_s4] sm:$0xff] %v664_v1  ;;  %v998_v2 = vpop.f32.mrb[1].mxu0  ;;  %v682_v4 = vmul.f32 %v664_v1, %v664_v1 }
 0x330   : > { %v667_v3 = vpop.f32.mrb[2].mxu0 }
 0x331   : > { %v672_v5 = vadd.f32 %v667_v3, %v664_v1  ;;  %v683_v6 = vmul.f32 %v667_v3, %v667_v3  ;;  %695 = vst [vmem:[%s693_s4 + $0x8] sm:$0xff] %v667_v3  ;;  %v999_v7 = vpop.f32.mrb[3].mxu0 }
 0x333   : > { %v673_v8 = vrot.slane %v672_v5, 4  ;;  %v684_v9 = vadd.f32 %v683_v6, %v682_v4 }
 0x335   : > { %v674_v10 = vadd.f32 %v673_v8, %v672_v5  ;;  %v685_v11 = vrot.slane %v684_v9, 4 }
 0x337   : > { %v675_v12 = vrot.slane %v674_v10, 2  ;;  %v686_v13 = vadd.f32 %v685_v11, %v684_v9 }
 0x339   : > { %v676_v14 = vadd.f32 %v675_v12, %v674_v10  ;;  %v687_v15 = vrot.slane %v686_v13, 2 }
 0x33b   : > { %v677_v16 = vrot.slane %v676_v14, 1  ;;  %v688_v17 = vadd.f32 %v687_v15, %v686_v13 }
 0x33d   : > { %v678_v19 = vadd.f32 %v677_v16, %v676_v14  ;;  %v689_v20 = vrot.slane %v688_v17, 1 }
 0x33f   : > { %v679_v22 = vadd.f32 %v678_v19, %v671_v18  ;;  %v690_v23 = vadd.f32 %v689_v20, %v688_v17 }
 0x341   : > { %680 = vst [vmem:[#allocation6] sm:$0x1] %v679_v22  ;;  %v691_v24 = vadd.f32 %v690_v23, %v681_v21 }
 0x343   : > { %692 = vst [vmem:[#allocation7] sm:$0x1] %v691_v24 }
 0x344 PF: > { %s2073_s23 = sld [smem:[#allocation32_spill]] }
 0x34a   : > { %p949_p12 = scmp.ne.s32.totalorder %s2073_s23, 2 }
 0x34b   : > { %s2074_s19 = sld [smem:[#allocation31_spill]] (!%p949_p12) }
 0x34c   : > { %699 = sbr.rel (%p949_p12) target bundleno = 890 (0x37a), region = 96 }
 0x351   : > { %p950_p6 = scmp.ne.s32.totalorder (!%p949_p12), %s2074_s19, 0 }
 0x353   : > { %702 = sbr.rel (%p950_p6) target bundleno = 880 (0x370), region = 100  ;;  %v703_v25 = vld [vmem:[#allocation6] sm:$0x1] (!%p950_p6)  ;;  %v705_v26 = vld [vmem:[#allocation7] sm:$0x1] (!%p950_p6) }
 0x354   : > { %v704_v27 = vmul.f32 (!%p950_p6), 0.03125, %v703_v25  ;;  %v706_v28 = vmul.f32 (!%p950_p6), 0.03125, %v705_v26  ;;  %v710_v33 = vld [vmem:[#allocation21] sm:$0x1] (!%p950_p6)  ;;  %v715_v36 = vld [vmem:[#allocation23] sm:$0x1] (!%p950_p6) }
 0x356   : > { %v707_v29 = vmul.f32 (!%p950_p6), %v704_v27, %v704_v27 }
 0x358   : > { %v708_v30 = vsub.f32 (!%p950_p6), %v706_v28, %v707_v29 }
 0x35a   : > { %v709_v31 = vmax.f32 %v708_v30, 0.0 }
 0x35c   : > { %v711_v32 = vadd.f32 1e-05, %v709_v31 }
 0x35e   : > { %1185 = vrsqrt.f32 %v711_v32 }
 0x368   : > { %v1186_v34 = vpop.eup %1185 }
 0x369   : > { %v713_v35 = vmul.f32 %v1186_v34, %v710_v33 }
 0x36b   : > { %714 = vst [vmem:[#allocation10] sm:$0x1] %v713_v35  ;;  %v716_v37 = vmul.f32 %v713_v35, %v704_v27 }
 0x36d   : > { %v717_v38 = vsub.f32 %v715_v36, %v716_v37 }
 0x36f   : > { %718 = vst [vmem:[#allocation11] sm:$0x1] %v717_v38 }
 0x370 PF: > { %s719_s13 = scalar_lea.vmem [#allocation3], %s1921_s22 }
 0x371   : > { %v720_v40 = vld [vmem:[%s719_s13] sm:$0xff]  ;;  %v721_v42 = vld [vmem:[%s719_s13 + $0x8] sm:$0xff] }
 0x372   : > { %v951_v39 = vld [vmem:[#allocation10] ss:$0 sm:$0xff] }
 0x373   : > { %v729_v43 = vmul.f32 %v951_v39, %v720_v40  ;;  %v730_v44 = vmul.f32 %v951_v39, %v721_v42 }
 0x376   : > { %v952_v41 = vld [vmem:[#allocation11] ss:$0 sm:$0xff] }
 0x377   : > { %v738_v45 = vadd.f32 %v952_v41, %v729_v43  ;;  %v739_v46 = vadd.f32 %v952_v41, %v730_v44 }
 0x379   : > { %740 = vst [vmem:[%s1927_s16] sm:$0xff] %v738_v45  ;;  %741 = vst [vmem:[%s1927_s16 + $0x8] sm:$0xff] %v739_v46 }
 0x37a PF: > { %s2075_s2 = sld [smem:[#allocation32_spill]]  ;;  %s2076_s27 = sld [smem:[#allocation31_spill]] }
 0x37b   : > { %s758_s3 = sshll.u32 %s1927_s16, 4  ;;  %s2077_s21 = sld [smem:[#allocation39_spill]]  ;;  %s1945_s3 = int_to_ptr.vmem [resolvable:$true] %s758_s3 }
 0x37c   : > { %s1954_s1 = scalar_lea.sflag [#allocation14], %s395_s30  ;;  %s1385_s4 = scalar_lea.vmem %s1945_s3, 256 }
 0x37d   : > { %p1386_p13 = scmp.ne.s32.totalorder %s1945_s3, %s1385_s4  ;;  %p2078_p7 = scmp.ne.s32.totalorder %s2059_s8, 0 }
 0x37e   : > { %s1535_s16 = smov [#allocation24]  }
 0x37f   : > { %p1387_p5 = pnand %p1386_p13, %p2078_p7  ;;  %s1389_s23 = sshll.u32 %s1535_s16, 4  ;;  %s1390_s23 = int_to_ptr.vmem [resolvable:$false] %s1389_s23 }
 0x380   : > { %p750_p9 = scmp.eq.s32.totalorder %s2075_s2, 2  ;;  %s1391_s19 = scalar_lea.vmem %s1390_s23, 512 }
 0x381   : > { %p1388_p8 = pneg %p1387_p5  ;;  %p1392_p1 = scmp.lt.s32.totalorder %s1945_s3, %s1390_s23 }
 0x382   : > { %s2098_s27 = smov (!%p750_p9, %s2076_s27), 0  ;;  %p1393_p2 = scmp.lt.s32.totalorder %s1391_s19, %s1385_s4 }
 0x383   : > { %s959_s22 = sshll.u32 %s2098_s27, 8 }
 0x384   : > { %s1950_s24 = scalar_lea.hbm %s2077_s21, %s959_s22  ;;  %p1394_p0 = por %p1393_p2, %p1392_p1 }
 0x386   : > { %p1395_p4 = pnand %p1394_p0, %p1388_p8 }
 0x388   : > { %1398 = shalt.err (!%p1395_p4)
}
 0x389   : > { %s1399_s30 = scalar_lea.hbm %s1950_s24, 256  ;;  %s1403_s27 = scalar_lea.hbm %s2077_s21, 512 }
 0x38a   : > { %p1400_p10 = scmp.ne.s32.totalorder %s1950_s24, %s1399_s30  ;;  %p1404_p12 = scmp.lt.u32.totalorder %s1950_s24, %s2077_s21 }
 0x38b   : > { %p1405_p6 = scmp.lt.u32.totalorder %s1403_s27, %s1399_s30  ;;  %p1407_p13 = scmp.lt.u32.totalorder %s1399_s30, %s1950_s24 }
 0x38c   : > { %p1401_p3 = pnand %p1400_p10, %p2078_p7 }
 0x38d   : > { %p1406_p9 = por %p1405_p6, %p1404_p12 }
 0x38e   : > { %p1402_p11 = pneg %p1401_p3 }
 0x38f   : > { %p1408_p5 = por %p1407_p13, %p1406_p9 }
 0x391   : > { %p1409_p8 = pnand %p1408_p5, %p1402_p11 }
 0x393   : > { %1412 = shalt.err (!%p1409_p8)
}
 0x394   : > { %s1536_s7 = smov 128   ;;  %s1537_s4 = smov 8  }
 0x395   : > { %1026 = dma.vmem_to_hbm [thread:$0]  (%p2078_p7), %s1945_s3, 256, %s1950_s24, %s1954_s1, %s1536_s7, %s1536_s7, %s1537_s4  }
 0x396 PF: > { %s2079_s16 = sld [smem:[#allocation30_spill]]  ;;  %p1068_p1 = scmp.ge.s32.totalorder %s1519_s11, 2 }
 0x397   : > { %p2080_p2 = scmp.ne.s32.totalorder %s2061_s18, 0 }
 0x399   : > { %p1052_p0 = pnand %p1068_p1, %p2080_p2 }
 0x39c   : > { %s773_s23 = sand.u32 1, %s2079_s16  }
 0x39d   : > { %s774_s19 = scalar_lea.sflag [#allocation14], %s773_s23 }
 0x39e   : > { %1474 = dma.done.wait (!%p1052_p0), %s774_s19, 256  }
 0x39f   : > { %1476 = vsyncadd (!%p1052_p0), %s774_s19, 4294967040  ;;  %s26_s11 = sadd.s32 1, %s1519_s11   ;;  %s2081_s24 = smov %s1483_s25 }
 0x3a0   : > { %p23_p4 = scmp.ge.s32.totalorder %s26_s11, 8   ;;  %s2082_s25 = smov %s1487_s26 }
 0x3a1   : > { %s2083_s26 = smov %s1845_s0  ;;  %s2084_s27 = smov %s1495_s28 }
 0x3a2   : > { %s2085_s28 = smov %s1499_s29  ;;  %s2086_s29 = smov %s1833_s15 }
 0x3a3   : > { %s2087_s30 = smov %s1511_s9  ;;  %s2088_s8 = smov %s1515_s10 }
 0x3a4   : > { %s2089_s9 = smov %s2092_s20  ;;  %s2090_s10 = smov %s2096_s17 }
 0x3a5   :  { %25 = sbr.rel (!%p23_p4) target bundleno = 19 (0x13), region = 145 }
 0x3ac   :  { %779 = vsyncpa [#allocation13], 1 }
 0x3ad   :  { %781 = vsyncpa [#allocation13 + $0x1], 1 }
 0x3ae   :  { %782 = vsyncpa [#allocation16], 1 }
 0x3af   :  { %783 = vsyncpa [#allocation19], 1 }
 0x3b0   :  { %784 = vsyncpa [#allocation22], 1 }
 0x3b1   :  { %785 = vsyncpa [#allocation14], 1 }
 0x3b2   :  { %787 = vsyncpa [#allocation14 + $0x1], 1 }

// kernel: tpu_custom_call.1
= control target key start
LH: loop header
LB: loop body
LE: loop exit
PB: predicated region body
PF: predicated region fallthrough
CT: control target
= control target key end

     0   :  { %s2015_s0 = inlined_call_operand.hbm [shape: bf16[32,32], index: 0, kind: input, shape index: {}]   ;;  %s2016_s1 = inlined_call_operand.hbm [shape: bf16[32,128], index: 1, kind: input, shape index: {}]   ;;  %s2017_s2 = inlined_call_operand.hbm [shape: f32[1,128], index: 2, kind: input, shape index: {}]   ;;  %s2018_s3 = inlined_call_operand.hbm [shape: f32[1,128], index: 3, kind: input, shape index: {}]   ;;  %s2019_s4 = inlined_call_operand.hbm [shape: bf16[128,128], index: 4, kind: input, shape index: {}]   ;;  %s2020_s5 = inlined_call_operand.hbm [shape: f32[1,128], index: 5, kind: input, shape index: {}]   ;;  %s2021_s6 = inlined_call_operand.hbm [shape: f32[1,128], index: 6, kind: input, shape index: {}]   ;;  %s2022_s7 = inlined_call_operand.hbm [shape: f32[32,128], index: 7, kind: output, shape index: {}]  }
   0x1   :  { %2035 = sst [smem:[#allocation34_spill]] %s2015_s0 }
   0x2   :  { %2036 = sst [smem:[#allocation35_spill]] %s2016_s1 }
   0x3   :  { %2037 = sst [smem:[#allocation36_spill]] %s2017_s2 }
   0x4   :  { %2038 = sst [smem:[#allocation37_spill]] %s2018_s3 }
   0x5   :  { %2039 = sst [smem:[#allocation38_spill]] %s2019_s4 }
   0x6   :  { %2040 = sst [smem:[#allocation39_spill]] %s2022_s7 }
   0x7   :  { %12 = vsyncpa [#allocation13], 0 }
   0x8   :  { %14 = vsyncpa [#allocation13 + $0x1], 0 }
   0x9   :  { %15 = vsyncpa [#allocation16], 0 }
   0xa   :  { %16 = vsyncpa [#allocation19], 0 }
   0xb   :  { %17 = vsyncpa [#allocation22], 0 }
   0xc   :  { %18 = vsyncpa [#allocation14], 0 }
   0xd   :  { %20 = vsyncpa [#allocation14 + $0x1], 0  ;;  %s1578_s24 = smov 0   ;;  %s1580_s25 = smov 0  }
   0xe   :  { %s1582_s26 = smov 0   ;;  %s1584_s27 = smov 0  }
   0xf   :  { %s1586_s28 = smov 0   ;;  %s1588_s29 = smov 0  }
  0x10   :  { %s1590_s30 = smov 0   ;;  %s1592_s8 = smov 0  }
  0x11   :  { %s1594_s9 = smov 0   ;;  %s1596_s10 = smov 0  }
  0x12   :  { %s1598_s11 = smov 0  }
  0x13 LB: > { %2041 = sst [smem:[#allocation30_spill]] %s1479_s24  ;;  %s2023_s12 = sadd.s32 4294967295, %s1519_s11   ;;  %s1519_s11 = sphi %s1598_s11, %s26_s11   ;;  %s1515_s10 = sphi %s1596_s10, %s2090_s10   ;;  %s1511_s9 = sphi %s1594_s9, %s2089_s9   ;;  %s1507_s8 = sphi %s1592_s8, %s2088_s8   ;;  %s1503_s30 = sphi %s1590_s30, %s2087_s30   ;;  %s1499_s29 = sphi %s1588_s29, %s2086_s29   ;;  %s1495_s28 = sphi %s1586_s28, %s2085_s28   ;;  %s1491_s27 = sphi %s1584_s27, %s2084_s27   ;;  %s1487_s26 = sphi %s1582_s26, %s2083_s26   ;;  %s1483_s25 = sphi %s1580_s25, %s2082_s25   ;;  %s1479_s24 = sphi %s1578_s24, %s2081_s24  }
  0x14   : > { %2042 = sst [smem:[#allocation31_spill]] %s1503_s30  ;;  %p909_p0 = scmp.ge.s32.totalorder %s1519_s11, 1 }
  0x15   : > { %2043 = sst [smem:[#allocation32_spill]] %s1507_s8  ;;  %p1637_p1 = scmp.eq.s32.totalorder %s2023_s12, 0 }
  0x16   : > { %p229_p2 = scmp.lt.s32.totalorder %s1519_s11, 7  ;;  %s1521_s15 = smov [#allocation15]  }
  0x17   : > { %s2044_s13 = scalar_select %p1637_p1, 1, 0 }
  0x18   : > { %p1642_p3 = pnand %p909_p0, %p229_p2  ;;  %s241_s16 = sshll.u32 %s1521_s15, 4  ;;  %s1646_s16 = int_to_ptr.vmem [resolvable:$true] %s241_s16 }
  0x19   : > { %s1522_s18 = smov [#allocation18]   ;;  %s1523_s20 = smov [#allocation21]  }
  0x1a   : > { %s2045_s14 = scalar_select %p1642_p3, 1, 0 }
  0x1b   : > { %p1028_p4 = pneg %p1642_p3  ;;  %s266_s19 = sshll.u32 %s1522_s18, 4  ;;  %s1656_s19 = int_to_ptr.vmem [resolvable:$true] %s266_s19 }
  0x1c   : > { %2046 = sst [smem:[#allocation33_spill]] %s2045_s14  ;;  %s1658_s21 = sshll.u32 %s1523_s20, 4  ;;  %s291_s21 = int_to_ptr.vmem [resolvable:$true] %s1658_s21 }
  0x1d   : > { %p1652_p5 = pnand %p1028_p4, %p1637_p1  ;;  %s2048_s1 = sld [smem:[#allocation35_spill]] }
  0x1f   : > { %p1668_p7 = pneg %p1652_p5 }
  0x23   : > { %s1187_s15 = scalar_lea.hbm %s2048_s1, 256 }
  0x24   : > { %p1188_p6 = scmp.ne.s32.totalorder %s2048_s1, %s1187_s15  ;;  %p1194_p10 = scmp.lt.u32.totalorder %s1187_s15, %s2048_s1 }
  0x26   : > { %p1190_p8 = pnand %p1668_p7, %p1188_p6 }
  0x28   : > { %p1191_p9 = pneg %p1190_p8 }
  0x2a   : > { %p1196_p11 = pnand %p1194_p10, %p1191_p9 }
  0x2c   : > { %1199 = shalt.err (!%p1196_p11)
}
  0x2d   : > { %s1200_s7 = scalar_lea.vmem %s1646_s16, 256  ;;  %p1208_p2 = scmp.lt.s32.totalorder %s1646_s16, %s1646_s16 }
  0x2e   : > { %p1201_p12 = scmp.ne.s32.totalorder %s1646_s16, %s1200_s7  ;;  %p1209_p4 = scmp.lt.s32.totalorder %s1200_s7, %s1200_s7 }
  0x30   : > { %p1203_p13 = pnand %p1201_p12, %p1668_p7  ;;  %p1210_p6 = por %p1209_p4, %p1208_p2 }
  0x32   : > { %p1204_p0 = pneg %p1203_p13 }
  0x34   : > { %p1211_p8 = pnand %p1210_p6, %p1204_p0 }
  0x36   : > { %1214 = shalt.err (!%p1211_p8)
}
  0x37   : > { %s2031_s12 = smov 64   ;;  %s2033_s22 = smov 4  }
  0x38   : > { %1031 = dma.hbm_to_vmem [thread:$0]  (!%p1652_p5), %s2048_s1, 256, %s1646_s16, [#allocation16], %s2031_s12, %s2031_s12, %s2033_s22  }
  0x39   : > { %s2050_s3 = sld [smem:[#allocation37_spill]] }
  0x3f   : > { %s1215_s7 = scalar_lea.hbm %s2050_s3, 16 }
  0x40   : > { %p1216_p9 = scmp.ne.s32.totalorder %s2050_s3, %s1215_s7  ;;  %p1222_p12 = scmp.lt.u32.totalorder %s1215_s7, %s2050_s3 }
  0x42   : > { %p1218_p10 = pnand %p1216_p9, %p1668_p7 }
  0x44   : > { %p1219_p11 = pneg %p1218_p10 }
  0x46   : > { %p1224_p13 = pnand %p1222_p12, %p1219_p11 }
  0x48   : > { %1227 = shalt.err (!%p1224_p13)
}
  0x49   : > { %s1228_s16 = scalar_lea.vmem %s1656_s19, 16  ;;  %s1235_s30 = scalar_lea.vmem %s1656_s19, 32 }
  0x4a   : > { %p1229_p0 = scmp.ne.s32.totalorder %s1656_s19, %s1228_s16  ;;  %p1236_p6 = scmp.lt.s32.totalorder %s1656_s19, %s1656_s19 }
  0x4b   : > { %p1237_p8 = scmp.lt.s32.totalorder %s1235_s30, %s1228_s16 }
  0x4c   : > { %p1231_p2 = pnand %p1229_p0, %p1668_p7 }
  0x4d   : > { %p1238_p9 = por %p1237_p8, %p1236_p6 }
  0x4e   : > { %p1232_p4 = pneg %p1231_p2 }
  0x50   : > { %p1239_p10 = pnand %p1238_p9, %p1232_p4 }
  0x52   : > { %1242 = shalt.err (!%p1239_p10)
}
  0x53   : > { %1037 = dma.hbm_to_vmem [thread:$0]  (!%p1652_p5), %s2050_s3, 16, %s1656_s19, [#allocation19]  }
  0x54   : > { %s1243_s15 = scalar_lea.hbm %s2020_s5, 16 }
  0x55   : > { %p1244_p11 = scmp.ne.s32.totalorder %s2020_s5, %s1243_s15  ;;  %p1250_p0 = scmp.lt.u32.totalorder %s1243_s15, %s2020_s5 }
  0x57   : > { %p1246_p12 = pnand %p1244_p11, %p1668_p7 }
  0x59   : > { %p1247_p13 = pneg %p1246_p12 }
  0x5b   : > { %p1252_p2 = pnand %p1250_p0, %p1247_p13 }
  0x5d   : > { %1255 = shalt.err (!%p1252_p2)
}
  0x5e   : > { %s1256_s30 = scalar_lea.vmem %s291_s21, 16  ;;  %s1263_s19 = scalar_lea.vmem %s291_s21, 32 }
  0x5f   : > { %p1257_p4 = scmp.ne.s32.totalorder %s291_s21, %s1256_s30  ;;  %p1264_p9 = scmp.lt.s32.totalorder %s291_s21, %s291_s21 }
  0x60   : > { %p1265_p10 = scmp.lt.s32.totalorder %s1263_s19, %s1256_s30 }
  0x61   : > { %p1259_p6 = pnand %p1257_p4, %p1668_p7 }
  0x62   : > { %p1266_p3 = por %p1265_p10, %p1264_p9 }
  0x63   : > { %p1260_p8 = pneg %p1259_p6 }
  0x65   : > { %p1267_p1 = pnand %p1266_p3, %p1260_p8 }
  0x67   : > { %1270 = shalt.err (!%p1267_p1)
}
  0x68   : > { %1043 = dma.hbm_to_vmem [thread:$0]  (!%p1652_p5), %s2020_s5, 16, %s291_s21, [#allocation22]  }
  0x69   : > { %s1526_s14 = smov [#allocation17]   ;;  %s1527_s15 = smov [#allocation20]  }
  0x6a   : > { %s255_s23 = sshll.u32 %s1526_s14, 4  ;;  %s276_s18 = sshll.u32 %s1527_s15, 4  ;;  %s256_s23 = int_to_ptr.vmem [resolvable:$true] %s255_s23  ;;  %s277_s18 = int_to_ptr.vmem [resolvable:$true] %s276_s18 }
  0x6b   : > { %s2051_s2 = sld [smem:[#allocation36_spill]] }
  0x71   : > { %s1271_s16 = scalar_lea.hbm %s2051_s2, 16 }
  0x72   : > { %p1272_p1 = scmp.ne.s32.totalorder %s2051_s2, %s1271_s16  ;;  %p1278_p12 = scmp.lt.u32.totalorder %s1271_s16, %s2051_s2 }
  0x74   : > { %p1274_p3 = pnand %p1272_p1, %p1668_p7 }
  0x76   : > { %p1275_p11 = pneg %p1274_p3 }
  0x78   : > { %p1280_p13 = pnand %p1278_p12, %p1275_p11 }
  0x7a   : > { %1283 = shalt.err (!%p1280_p13)
}
  0x7b   : > { %s1284_s21 = scalar_lea.vmem %s256_s23, 16  ;;  %s1291_s24 = scalar_lea.vmem %s256_s23, 32 }
  0x7c   : > { %p1285_p0 = scmp.ne.s32.totalorder %s256_s23, %s1284_s21  ;;  %p1292_p6 = scmp.lt.s32.totalorder %s256_s23, %s256_s23 }
  0x7d   : > { %p1293_p8 = scmp.lt.s32.totalorder %s1291_s24, %s1284_s21 }
  0x7e   : > { %p1287_p2 = pnand %p1285_p0, %p1668_p7 }
  0x7f   : > { %p1294_p9 = por %p1293_p8, %p1292_p6 }
  0x80   : > { %p1288_p4 = pneg %p1287_p2 }
  0x82   : > { %p1295_p10 = pnand %p1294_p9, %p1288_p4 }
  0x84   : > { %1298 = shalt.err (!%p1295_p10)
}
  0x85   : > { %1034 = dma.hbm_to_vmem [thread:$0]  (!%p1652_p5), %s2051_s2, 16, %s256_s23, [#allocation16]  }
  0x86   : > { %s2052_s4 = sld [smem:[#allocation38_spill]] }
  0x8c   : > { %s1299_s7 = scalar_lea.hbm %s2052_s4, 1024 }
  0x8d   : > { %p1300_p1 = scmp.ne.s32.totalorder %s2052_s4, %s1299_s7  ;;  %p1306_p12 = scmp.lt.u32.totalorder %s1299_s7, %s2052_s4 }
  0x8f   : > { %p1302_p3 = pnand %p1300_p1, %p1668_p7 }
  0x91   : > { %p1303_p11 = pneg %p1302_p3 }
  0x93   : > { %p1308_p13 = pnand %p1306_p12, %p1303_p11 }
  0x95   : > { %1311 = shalt.err (!%p1308_p13)
}
  0x96   : > { %s1312_s21 = scalar_lea.vmem %s277_s18, 1024  ;;  %p1320_p6 = scmp.lt.s32.totalorder %s277_s18, %s277_s18 }
  0x97   : > { %p1313_p0 = scmp.ne.s32.totalorder %s277_s18, %s1312_s21  ;;  %p1321_p8 = scmp.lt.s32.totalorder %s1312_s21, %s1312_s21 }
  0x99   : > { %p1315_p2 = pnand %p1313_p0, %p1668_p7  ;;  %p1322_p9 = por %p1321_p8, %p1320_p6 }
  0x9b   : > { %p1316_p4 = pneg %p1315_p2 }
  0x9d   : > { %p1323_p10 = pnand %p1322_p9, %p1316_p4 }
  0x9f   : > { %1326 = shalt.err (!%p1323_p10)
}
  0xa0   : > { %s2053_s23 = smov 64   ;;  %s1528_s15 = smov [#allocation23]  }
  0xa1   : > { %1040 = dma.hbm_to_vmem [thread:$0]  (!%p1652_p5), %s2052_s4, 1024, %s277_s18, [#allocation19], %s2053_s23, %s2053_s23, %s2033_s22  }
  0xa2   : > { %s301_s12 = sshll.u32 %s1528_s15, 4  ;;  %s1327_s16 = scalar_lea.hbm %s2021_s6, 16  ;;  %s302_s12 = int_to_ptr.vmem [resolvable:$true] %s301_s12 }
  0xa3   : > { %p1328_p1 = scmp.ne.s32.totalorder %s2021_s6, %s1327_s16  ;;  %p1334_p12 = scmp.lt.u32.totalorder %s1327_s16, %s2021_s6 }
  0xa5   : > { %p1330_p3 = pnand %p1328_p1, %p1668_p7 }
  0xa7   : > { %p1331_p11 = pneg %p1330_p3 }
  0xa9   : > { %p1336_p13 = pnand %p1334_p12, %p1331_p11 }
  0xab   : > { %1339 = shalt.err (!%p1336_p13)
}
  0xac   : > { %s1340_s18 = scalar_lea.vmem %s302_s12, 16  ;;  %s1347_s24 = scalar_lea.vmem %s302_s12, 32 }
  0xad   : > { %p1341_p0 = scmp.ne.s32.totalorder %s302_s12, %s1340_s18  ;;  %p1348_p6 = scmp.lt.s32.totalorder %s302_s12, %s302_s12 }
  0xae   : > { %p1349_p8 = scmp.lt.s32.totalorder %s1347_s24, %s1340_s18 }
  0xaf   : > { %p1343_p2 = pnand %p1341_p0, %p1668_p7 }
  0xb0   : > { %p1350_p9 = por %p1349_p8, %p1348_p6 }
  0xb1   : > { %p1344_p4 = pneg %p1343_p2 }
  0xb3   : > { %p1351_p10 = pnand %p1350_p9, %p1344_p4 }
  0xb5   : > { %1354 = shalt.err (!%p1351_p10)
}
  0xb6   : > { %1046 = dma.hbm_to_vmem [thread:$0]  (!%p1652_p5), %s2021_s6, 16, %s302_s12, [#allocation22]  }
  0xb7   : > { %s35_s20 = sadd.s32 1, %s1511_s9  ;;  %s38_s17 = sadd.s32 1, %s1515_s10 }
  0xb8   : > { %p36_p7 = scmp.ge.s32.totalorder %s35_s20, 2  ;;  %p42_p1 = scmp.eq.s32.totalorder %s1515_s10, 0 }
  0xb9   : > { %s49_s7 = sadd.s32 1, %s1499_s29  ;;  %p56_p3 = scmp.ne.s32.totalorder %s1499_s29, %s1495_s28 }
  0xba   : > { %s2092_s20 = smov (%p36_p7, %s35_s20), 0  ;;  %s2094_s17 = smov (!%p36_p7, %s38_s17), %s1515_s10 }
  0xbb   : > { %s1801_s16 = scalar_select %p42_p1, %s1511_s9, 1 }
  0xbc   : > { %p40_p5 = scmp.ge.s32.totalorder %s2094_s17, 3  ;;  %p57_p11 = scmp.eq.s32.totalorder %s1519_s11, 0 }
  0xbd   : > { %p62_p12 = scmp.ne.s32.totalorder %s1495_s28, %s1491_s27  ;;  %p2055_p0 = scmp.ne.s32.totalorder %s2044_s13, 0 }
  0xbe   : > { %s2096_s17 = smov (%p40_p5, %s2094_s17), 0  ;;  %p1810_p13 = por %p57_p11, %p56_p3 }
  0xbf   : > { %p1816_p2 = por %p2055_p0, %p62_p12  ;;  %s2057_s19 = sld [smem:[#allocation30_spill]] }
  0xc0   : > { %p44_p4 = scmp.eq.s32.totalorder %s2096_s17, 0  ;;  %p198_p6 = scmp.eq.s32.totalorder %s1515_s10, 2 }
  0xc1   : > { %p200_p8 = scmp.eq.s32.totalorder %s2096_s17, 2  ;;  %s205_s27 = sadd.s32 1, %s1487_s26 }
  0xc2   : > { %s45_s0 = scalar_select %p44_p4, %s2092_s20, 1 }
  0xc3   : > { %s199_s21 = scalar_select %p198_p6, %s1511_s9, 0 }
  0xc4   : > { %s46_s18 = ssub.s32 %s1801_s16, %s45_s0  ;;  %p215_p9 = scmp.ne.s32.totalorder %s1487_s26, %s1483_s25 }
  0xc5   : > { %p47_p10 = scmp.eq.s32.totalorder %s46_s18, 0  ;;  %s2058_s24 = sadd.s32 4294967295, %s1519_s11  }
  0xc6   : > { %p216_p7 = scmp.eq.s32.totalorder %s2058_s24, 5  ;;  %p221_p3 = scmp.ne.s32.totalorder %s1483_s25, %s2057_s19 }
  0xc7   : > { %s201_s14 = scalar_select %p200_p8, %s2092_s20, 0 }
  0xc8   : > { %s1833_s15 = scalar_select %p47_p10, %s1499_s29, %s49_s7  }
  0xc9   : > { %s202_s22 = ssub.s32 %s199_s21, %s201_s14  ;;  %p1835_p1 = por %p216_p7, %p215_p9 }
  0xca   : > { %p203_p5 = scmp.eq.s32.totalorder %s202_s22, 0  ;;  %s2060_s1 = sadd.s32 4294967294, %s1519_s11  }
  0xcb   : > { %s2059_s8 = scalar_select %p1835_p1, 1, 0 }
  0xcc   : > { %p222_p11 = scmp.eq.s32.totalorder %s2060_s1, 5  ;;  %p1061_p12 = scmp.lt.s32.totalorder %s1519_s11, 6 }
  0xcd   : > { %s1845_s0 = scalar_select %p203_p5, %s1487_s26, %s205_s27  }
  0xce   : > { %p1847_p0 = por %p222_p11, %p221_p3  ;;  %s312_s24 = sand.u32 1, %s1499_s29  }
  0xcf   : > { %s917_s7 = sshll.u32 %s312_s24, 3  ;;  %s958_s2 = sshll.u32 %s1801_s16, 7 }
  0xd0   : > { %s2061_s18 = scalar_select %p1847_p0, 1, 0 }
  0xd1   : > { %s2062_s14 = sld [smem:[#allocation34_spill]]  ;;  %s316_s1 = scalar_lea.vmem [#allocation12], %s917_s7 }
  0xd2   : > { %s325_s22 = sshll.u32 %s316_s1, 4  ;;  %p1862_p4 = pnand %p1061_p12, %p1810_p13  ;;  %s1858_s22 = int_to_ptr.vmem [resolvable:$true] %s325_s22 }
  0xd3   : > { %s1866_s16 = scalar_lea.sflag [#allocation13], %s312_s24 }
  0xd4   : > { %p1357_p8 = pneg %p1862_p4 }
  0xd7   : > { %s1856_s4 = scalar_lea.hbm %s2062_s14, %s958_s2  ;;  %s1360_s12 = scalar_lea.hbm %s2062_s14, 256 }
  0xd8   : > { %s1355_s3 = scalar_lea.hbm %s1856_s4, 128  ;;  %p1361_p13 = scmp.lt.u32.totalorder %s1856_s4, %s2062_s14 }
  0xd9   : > { %p1356_p6 = scmp.ne.s32.totalorder %s1856_s4, %s1355_s3  ;;  %p1362_p7 = scmp.lt.u32.totalorder %s1360_s12, %s1355_s3 }
  0xda   : > { %p1364_p3 = scmp.lt.u32.totalorder %s1355_s3, %s1856_s4 }
  0xdb   : > { %p1358_p9 = pnand %p1357_p8, %p1356_p6  ;;  %p1363_p5 = por %p1362_p7, %p1361_p13 }
  0xdd   : > { %p1359_p10 = pneg %p1358_p9  ;;  %p1365_p11 = por %p1364_p3, %p1363_p5 }
  0xdf   : > { %p1366_p12 = pnand %p1365_p11, %p1359_p10 }
  0xe1   : > { %1369 = shalt.err (!%p1366_p12)
}
  0xe2   : > { %s1370_s24 = scalar_lea.vmem %s1858_s22, 128  ;;  %s1529_s1 = smov [#allocation12]  }
  0xe3   : > { %p1371_p6 = scmp.ne.s32.totalorder %s1858_s22, %s1370_s24  ;;  %s1375_s2 = sshll.u32 %s1529_s1, 4  ;;  %s1376_s2 = int_to_ptr.vmem [resolvable:$false] %s1375_s2 }
  0xe4   : > { %s1377_s27 = scalar_lea.vmem %s1376_s2, 256  ;;  %p1378_p1 = scmp.lt.s32.totalorder %s1858_s22, %s1376_s2 }
  0xe5   : > { %p1373_p9 = pnand %p1371_p6, %p1357_p8  ;;  %p1379_p13 = scmp.lt.s32.totalorder %s1377_s27, %s1370_s24 }
  0xe7   : > { %p1374_p0 = pneg %p1373_p9  ;;  %p1380_p7 = por %p1379_p13, %p1378_p1 }
  0xe9   : > { %p1381_p5 = pnand %p1380_p7, %p1374_p0 }
  0xeb   : > { %1384 = shalt.err (!%p1381_p5)
}
  0xec   : > { %s2064_s3 = smov 4   ;;  %s2065_s12 = sld [smem:[#allocation33_spill]] }
  0xed   : > { %1050 = dma.hbm_to_vmem [thread:$0]  (!%p1862_p4), %s1856_s4, 128, %s1858_s22, %s1866_s16, %s2053_s23, %s2053_s23, %s2064_s3  }
  0xf2   : > { %p2066_p8 = scmp.ne.s32.totalorder %s2065_s12, 0 }
  0xf3   : > { %s339_s7 = sand.u32 (!%p2066_p8), 1, %s1495_s28  }
  0xf4   : > { %337 = sbr.rel (%p2066_p8) target bundleno = 918 (0x396), region = 48  ;;  %s1900_s21 = sshll.u32 (!%p2066_p8), %s339_s7, 3 }
  0xf5   : > { %s340_s24 = scalar_lea.sflag (!%p2066_p8), [#allocation13], %s339_s7  ;;  %s343_s1 = scalar_lea.vmem (!%p2066_p8), [#allocation12], %s1900_s21 }
  0xfb   : > { %1458 = dma.done.wait (%p1816_p2), %s340_s24, 128  }
  0xfc   : > { %1460 = vsyncadd (%p1816_p2), %s340_s24, 4294967168  ;;  %p2067_p1 = scmp.ne.s32.totalorder %s2044_s13, 0 }
  0xfe   : > { %1462 = dma.done.wait (%p2067_p1), [#allocation16], 272  }
  0xff   : > { %1464 = vsyncadd (%p2067_p1), [#allocation16], 4294967024 }
 0x100   : > { %1466 = dma.done.wait (%p2067_p1), [#allocation19], 1040  }
 0x101   : > { %1468 = vsyncadd (%p2067_p1), [#allocation19], 4294966256 }
 0x102   : > { %1470 = dma.done.wait (%p2067_p1), [#allocation22], 32  }
 0x103   : > { %1472 = vsyncadd (%p2067_p1), [#allocation22], 4294967264  ;;  %s2068_s4 = sld [smem:[#allocation31_spill]]  ;;  %s2069_s23 = sld [smem:[#allocation32_spill]] }
 0x104   : > { %s395_s30 = sand.u32 1, %s1483_s25  }
 0x105   : > { %s928_s19 = sshll.u32 %s395_s30, 4 }
 0x106   : > { %s1927_s16 = scalar_lea.vmem [#allocation24], %s928_s19 }
 0x109   : > { %s1921_s22 = sshll.u32 %s2068_s4, 4  ;;  %p406_p2 = scmp.eq.s32.totalorder %s2069_s23, 0 }
 0x10a   : > { %p407_p0 = scmp.eq.s32.totalorder %s2068_s4, 0 }
 0x10c   : > { %p408_p4 = pnand %p407_p0, %p406_p2 }
 0x10d   : > { %v1530_v0 = vmov (!%p408_p4), 0.0  }
 0x10e   : > { %411 = sbr.rel (%p408_p4) target bundleno = 277 (0x115), region = 80  ;;  %412 = vst [vmem:[#allocation4] sm:$0x1] (!%p408_p4), %v1530_v0  ;;  %413 = vst [vmem:[#allocation5] sm:$0x1] (!%p408_p4), %v1530_v0 }
 0x10f   : > { %414 = vst [vmem:[#allocation6] sm:$0x1] (!%p408_p4), %v1530_v0  ;;  %415 = vst [vmem:[#allocation7] sm:$0x1] (!%p408_p4), %v1530_v0 }
 0x115 PF: > { %s2070_s13 = sld [smem:[#allocation32_spill]] }
 0x11b   : > { %p930_p10 = scmp.ne.s32.totalorder %s2070_s13, 0 }
 0x11c   : > { %v1172_v1 = vld [vmem:[#allocation15] sm:$0xff] (!%p930_p10)   ;;  %v1531_v2 = vmov (!%p930_p10), 0.0   ;;  %v1173_v3 = vld [vmem:[#allocation15 + $0x8] sm:$0xff] (!%p930_p10)   ;;  %vm1532_vm0 = vmmov (!%p930_p10), 0   ;;  %v1174_v4 = vld [vmem:[%s343_s1] sm:$0xff] (!%p930_p10)   ;;  %vm442_vm1 = vcmask (!%p930_p10), 261120  }
 0x11d   : > { %418 = sbr.rel (%p930_p10) target bundleno = 526 (0x20e), region = 84  ;;  %972 = vmatprep.subr.bf16.mxu0 (!%p930_p10), %v1531_v2  ;;  %976 = vmatprep.mubr.msk.bf16.mxu0 (!%p930_p10), %vm1532_vm0, %v1531_v2  ;;  %s510_s2 = sshra.s32 (!%p930_p10), %s1921_s22, 4  ;;  %v487_v23 = vld [vmem:[#allocation4] sm:$0x1] (!%p930_p10)  ;;  %v497_v26 = vld [vmem:[#allocation5] sm:$0x1] (!%p930_p10) }
 0x11e   : > { %973 = vmatpush3.bf16.msra.mxu0 (!%p930_p10), %v1172_v1  ;;  %s935_s27 = sshll.u32 (!%p930_p10), %s510_s2, 3 }
 0x11f   : > { %974 = vmatprep.subr.bf16.mxu0 (!%p930_p10), %v1531_v2  ;;  %s513_s3 = scalar_lea.vmem (!%p930_p10), [#allocation2], %s935_s27 }
 0x122   : > { %975 = vmatpush3.bf16.msra.mxu0 (!%p930_p10), %v1173_v3 }
 0x125   : > { %977 = vmatmul.mubr.msk.bf16.vlgmr.msra.gmra.mrb[0].mxu0 %vm442_vm1, %v1174_v4 }
 0x1f8   : > { %v480_v5 = vpop.f32.mrb[0].mxu0 }
 0x1f9   : > { %v978_v6 = vpop.f32.mrb[1].mxu0  ;;  %v498_v8 = vmul.f32 %v480_v5, %v480_v5 }
 0x1fa   : > { %v483_v7 = vpop.f32.mrb[2].mxu0 }
 0x1fb   : > { %v488_v9 = vadd.f32 %v483_v7, %v480_v5  ;;  %v499_v10 = vmul.f32 %v483_v7, %v483_v7  ;;  %v509_v11 = vpack.c.bf16 %v483_v7, %v480_v5  ;;  %v979_v12 = vpop.f32.mrb[3].mxu0 }
 0x1fd   : > { %v489_v13 = vrot.slane %v488_v9, 4  ;;  %v500_v14 = vadd.f32 %v499_v10, %v498_v8  ;;  %514 = vst [vmem:[%s513_s3] sm:$0xff] %v509_v11 }
 0x1ff   : > { %v490_v15 = vadd.f32 %v489_v13, %v488_v9  ;;  %v501_v16 = vrot.slane %v500_v14, 4 }
 0x201   : > { %v491_v17 = vrot.slane %v490_v15, 2  ;;  %v502_v18 = vadd.f32 %v501_v16, %v500_v14 }
 0x203   : > { %v492_v19 = vadd.f32 %v491_v17, %v490_v15  ;;  %v503_v20 = vrot.slane %v502_v18, 2 }
 0x205   : > { %v493_v21 = vrot.slane %v492_v19, 1  ;;  %v504_v22 = vadd.f32 %v503_v20, %v502_v18 }
 0x207   : > { %v494_v24 = vadd.f32 %v493_v21, %v492_v19  ;;  %v505_v25 = vrot.slane %v504_v22, 1 }
 0x209   : > { %v495_v27 = vadd.f32 %v494_v24, %v487_v23  ;;  %v506_v28 = vadd.f32 %v505_v25, %v504_v22 }
 0x20b   : > { %496 = vst [vmem:[#allocation4] sm:$0x1] %v495_v27  ;;  %v507_v29 = vadd.f32 %v506_v28, %v497_v26 }
 0x20d   : > { %508 = vst [vmem:[#allocation5] sm:$0x1] %v507_v29 }
 0x20e PF: > { %s2071_s12 = sld [smem:[#allocation32_spill]] }
 0x214   : > { %p936_p3 = scmp.ne.s32.totalorder %s2071_s12, 1 }
 0x215   : > { %s2072_s7 = sld [smem:[#allocation31_spill]] (!%p936_p3) }
 0x216   : > { %518 = sbr.rel (%p936_p3) target bundleno = 836 (0x344), region = 88 }
 0x21b   : > { %p937_p11 = scmp.ne.s32.totalorder (!%p936_p3), %s2072_s7, 0 }
 0x21d   : > { %521 = sbr.rel (%p937_p11) target bundleno = 570 (0x23a), region = 92  ;;  %v522_v30 = vld [vmem:[#allocation4] sm:$0x1] (!%p937_p11)  ;;  %v524_v31 = vld [vmem:[#allocation5] sm:$0x1] (!%p937_p11) }
 0x21e   : > { %v523_v32 = vmul.f32 (!%p937_p11), 0.03125, %v522_v30  ;;  %v525_v33 = vmul.f32 (!%p937_p11), 0.03125, %v524_v31  ;;  %v529_v38 = vld [vmem:[#allocation17] sm:$0x1] (!%p937_p11)  ;;  %v534_v41 = vld [vmem:[#allocation18] sm:$0x1] (!%p937_p11) }
 0x220   : > { %v526_v34 = vmul.f32 (!%p937_p11), %v523_v32, %v523_v32 }
 0x222   : > { %v527_v35 = vsub.f32 (!%p937_p11), %v525_v33, %v526_v34 }
 0x224   : > { %v528_v36 = vmax.f32 %v527_v35, 0.0 }
 0x226   : > { %v530_v37 = vadd.f32 1e-05, %v528_v36 }
 0x228   : > { %1175 = vrsqrt.f32 %v530_v37 }
 0x232   : > { %v1176_v39 = vpop.eup %1175 }
 0x233   : > { %v532_v40 = vmul.f32 %v1176_v39, %v529_v38 }
 0x235   : > { %533 = vst [vmem:[#allocation8] sm:$0x1] %v532_v40  ;;  %v535_v42 = vmul.f32 %v532_v40, %v523_v32 }
 0x237   : > { %v536_v43 = vsub.f32 %v534_v41, %v535_v42 }
 0x239   : > { %537 = vst [vmem:[#allocation9] sm:$0x1] %v536_v43 }
 0x23a PF: > { %v1177_v44 = vld [vmem:[#allocation20] sm:$0xff]   ;;  %v1533_v45 = vmov 0.0   ;;  %v1178_v46 = vld [vmem:[#allocation20 + $0x8] sm:$0xff]   ;;  %vm1534_vm2 = vmmov 0   ;;  %s538_s21 = sshra.s32 %s1921_s22, 4  ;;  %v1179_v47 = vld [vmem:[#allocation20 + $0x10] sm:$0xff]  }
 0x23b   : > { %980 = vmatprep.subr.bf16.mxu0 %v1533_v45  ;;  %996 = vmatprep.mubr.msk.bf16.mxu0 %vm1534_vm2, %v1533_v45  ;;  %s938_s24 = sshll.u32 %s538_s21, 3  ;;  %v1180_v48 = vld [vmem:[#allocation20 + $0x18] sm:$0xff]   ;;  %v1181_v52 = vld [vmem:[#allocation20 + $0x20] sm:$0xff]   ;;  %v1182_v56 = vld [vmem:[#allocation20 + $0x28] sm:$0xff]   ;;  %s693_s4 = scalar_lea.vmem [#allocation3], %s1921_s22 }
 0x23c   : > { %981 = vmatpush3.bf16.msra.mxu0 %v1177_v44  ;;  %s541_s1 = scalar_lea.vmem [#allocation2], %s938_s24  ;;  %v939_v53 = vld [vmem:[#allocation8] ss:$0 sm:$0xff]  ;;  %v1183_v60 = vld [vmem:[#allocation20 + $0x30] sm:$0xff]  }
 0x23d   : > { %982 = vmatprep.subr.bf16.mxu0 %v1533_v45  ;;  %v542_v49 = vld [vmem:[%s541_s1] sm:$0xff]  ;;  %v1184_v63 = vld [vmem:[#allocation20 + $0x38] sm:$0xff]   ;;  %v671_v18 = vld [vmem:[#allocation6] sm:$0x1] }
 0x23e   : > { %v543_v50 = vunpack.c.l.bf16 %v542_v49  ;;  %v544_v51 = vunpack.c.h.bf16 %v542_v49  ;;  %v681_v21 = vld [vmem:[#allocation7] sm:$0x1] }
 0x240   : > { %983 = vmatpush3.bf16.msra.mxu0 %v1178_v46  ;;  %v552_v54 = vmul.f32 %v939_v53, %v543_v50  ;;  %v553_v55 = vmul.f32 %v939_v53, %v544_v51  ;;  %v940_v57 = vld [vmem:[#allocation9] ss:$0 sm:$0xff] }
 0x241   : > { %984 = vmatprep.subr.bf16.mxu0 %v1533_v45 }
 0x242   : > { %v561_v58 = vadd.f32 %v940_v57, %v552_v54  ;;  %v562_v59 = vadd.f32 %v940_v57, %v553_v55 }
 0x244   : > { %985 = vmatpush3.bf16.msra.mxu0 %v1179_v47  ;;  %v563_v61 = vmax.f32 %v561_v58, 0.0  ;;  %v564_v62 = vmax.f32 %v562_v59, 0.0 }
 0x245   : > { %986 = vmatprep.subr.bf16.mxu0 %v1533_v45 }
 0x246   : > { %v565_v0 = vpack.c.bf16 %v564_v62, %v563_v61 }
 0x248   : > { %987 = vmatpush3.bf16.msra.mxu0 %v1180_v48 }
 0x249   : > { %988 = vmatprep.subr.bf16.mxu0 %v1533_v45 }
 0x24c   : > { %989 = vmatpush3.bf16.msra.mxu0 %v1181_v52 }
 0x24d   : > { %990 = vmatprep.subr.bf16.mxu0 %v1533_v45 }
 0x250   : > { %991 = vmatpush3.bf16.msra.mxu0 %v1182_v56 }
 0x251   : > { %992 = vmatprep.subr.bf16.mxu0 %v1533_v45 }
 0x254   : > { %993 = vmatpush3.bf16.msra.mxu0 %v1183_v60 }
 0x255   : > { %994 = vmatprep.subr.bf16.mxu0 %v1533_v45 }
 0x258   : > { %995 = vmatpush3.bf16.msra.mxu0 %v1184_v63 }
 0x25b   : > { %997 = vmatmul.mubr.bf16.vlgmr.msra.gmra.mrb[0].mxu0 %v565_v0 }
 0x32e   : > { %v664_v1 = vpop.f32.mrb[0].mxu0 }
 0x32f   : > { %694 = vst [vmem:[%s693_s4] sm:$0xff] %v664_v1  ;;  %v998_v2 = vpop.f32.mrb[1].mxu0  ;;  %v682_v4 = vmul.f32 %v664_v1, %v664_v1 }
 0x330   : > { %v667_v3 = vpop.f32.mrb[2].mxu0 }
 0x331   : > { %v672_v5 = vadd.f32 %v667_v3, %v664_v1  ;;  %v683_v6 = vmul.f32 %v667_v3, %v667_v3  ;;  %695 = vst [vmem:[%s693_s4 + $0x8] sm:$0xff] %v667_v3  ;;  %v999_v7 = vpop.f32.mrb[3].mxu0 }
 0x333   : > { %v673_v8 = vrot.slane %v672_v5, 4  ;;  %v684_v9 = vadd.f32 %v683_v6, %v682_v4 }
 0x335   : > { %v674_v10 = vadd.f32 %v673_v8, %v672_v5  ;;  %v685_v11 = vrot.slane %v684_v9, 4 }
 0x337   : > { %v675_v12 = vrot.slane %v674_v10, 2  ;;  %v686_v13 = vadd.f32 %v685_v11, %v684_v9 }
 0x339   : > { %v676_v14 = vadd.f32 %v675_v12, %v674_v10  ;;  %v687_v15 = vrot.slane %v686_v13, 2 }
 0x33b   : > { %v677_v16 = vrot.slane %v676_v14, 1  ;;  %v688_v17 = vadd.f32 %v687_v15, %v686_v13 }
 0x33d   : > { %v678_v19 = vadd.f32 %v677_v16, %v676_v14  ;;  %v689_v20 = vrot.slane %v688_v17, 1 }
 0x33f   : > { %v679_v22 = vadd.f32 %v678_v19, %v671_v18  ;;  %v690_v23 = vadd.f32 %v689_v20, %v688_v17 }
 0x341   : > { %680 = vst [vmem:[#allocation6] sm:$0x1] %v679_v22  ;;  %v691_v24 = vadd.f32 %v690_v23, %v681_v21 }
 0x343   : > { %692 = vst [vmem:[#allocation7] sm:$0x1] %v691_v24 }
 0x344 PF: > { %s2073_s23 = sld [smem:[#allocation32_spill]] }
 0x34a   : > { %p949_p12 = scmp.ne.s32.totalorder %s2073_s23, 2 }
 0x34b   : > { %s2074_s19 = sld [smem:[#allocation31_spill]] (!%p949_p12) }
 0x34c   : > { %699 = sbr.rel (%p949_p12) target bundleno = 890 (0x37a), region = 96 }
 0x351   : > { %p950_p6 = scmp.ne.s32.totalorder (!%p949_p12), %s2074_s19, 0 }
 0x353   : > { %702 = sbr.rel (%p950_p6) target bundleno = 880 (0x370), region = 100  ;;  %v703_v25 = vld [vmem:[#allocation6] sm:$0x1] (!%p950_p6)  ;;  %v705_v26 = vld [vmem:[#allocation7] sm:$0x1] (!%p950_p6) }
 0x354   : > { %v704_v27 = vmul.f32 (!%p950_p6), 0.03125, %v703_v25  ;;  %v706_v28 = vmul.f32 (!%p950_p6), 0.03125, %v705_v26  ;;  %v710_v33 = vld [vmem:[#allocation21] sm:$0x1] (!%p950_p6)  ;;  %v715_v36 = vld [vmem:[#allocation23] sm:$0x1] (!%p950_p6) }
 0x356   : > { %v707_v29 = vmul.f32 (!%p950_p6), %v704_v27, %v704_v27 }
 0x358   : > { %v708_v30 = vsub.f32 (!%p950_p6), %v706_v28, %v707_v29 }
 0x35a   : > { %v709_v31 = vmax.f32 %v708_v30, 0.0 }
 0x35c   : > { %v711_v32 = vadd.f32 1e-05, %v709_v31 }
 0x35e   : > { %1185 = vrsqrt.f32 %v711_v32 }
 0x368   : > { %v1186_v34 = vpop.eup %1185 }
 0x369   : > { %v713_v35 = vmul.f32 %v1186_v34, %v710_v33 }
 0x36b   : > { %714 = vst [vmem:[#allocation10] sm:$0x1] %v713_v35  ;;  %v716_v37 = vmul.f32 %v713_v35, %v704_v27 }
 0x36d   : > { %v717_v38 = vsub.f32 %v715_v36, %v716_v37 }
 0x36f   : > { %718 = vst [vmem:[#allocation11] sm:$0x1] %v717_v38 }
 0x370 PF: > { %s719_s13 = scalar_lea.vmem [#allocation3], %s1921_s22 }
 0x371   : > { %v720_v40 = vld [vmem:[%s719_s13] sm:$0xff]  ;;  %v721_v42 = vld [vmem:[%s719_s13 + $0x8] sm:$0xff] }
 0x372   : > { %v951_v39 = vld [vmem:[#allocation10] ss:$0 sm:$0xff] }
 0x373   : > { %v729_v43 = vmul.f32 %v951_v39, %v720_v40  ;;  %v730_v44 = vmul.f32 %v951_v39, %v721_v42 }
 0x376   : > { %v952_v41 = vld [vmem:[#allocation11] ss:$0 sm:$0xff] }
 0x377   : > { %v738_v45 = vadd.f32 %v952_v41, %v729_v43  ;;  %v739_v46 = vadd.f32 %v952_v41, %v730_v44 }
 0x379   : > { %740 = vst [vmem:[%s1927_s16] sm:$0xff] %v738_v45  ;;  %741 = vst [vmem:[%s1927_s16 + $0x8] sm:$0xff] %v739_v46 }
 0x37a PF: > { %s2075_s2 = sld [smem:[#allocation32_spill]]  ;;  %s2076_s27 = sld [smem:[#allocation31_spill]] }
 0x37b   : > { %s758_s3 = sshll.u32 %s1927_s16, 4  ;;  %s2077_s21 = sld [smem:[#allocation39_spill]]  ;;  %s1945_s3 = int_to_ptr.vmem [resolvable:$true] %s758_s3 }
 0x37c   : > { %s1954_s1 = scalar_lea.sflag [#allocation14], %s395_s30  ;;  %s1385_s4 = scalar_lea.vmem %s1945_s3, 256 }
 0x37d   : > { %p1386_p13 = scmp.ne.s32.totalorder %s1945_s3, %s1385_s4  ;;  %p2078_p7 = scmp.ne.s32.totalorder %s2059_s8, 0 }
 0x37e   : > { %s1535_s16 = smov [#allocation24]  }
 0x37f   : > { %p1387_p5 = pnand %p1386_p13, %p2078_p7  ;;  %s1389_s23 = sshll.u32 %s1535_s16, 4  ;;  %s1390_s23 = int_to_ptr.vmem [resolvable:$false] %s1389_s23 }
 0x380   : > { %p750_p9 = scmp.eq.s32.totalorder %s2075_s2, 2  ;;  %s1391_s19 = scalar_lea.vmem %s1390_s23, 512 }
 0x381   : > { %p1388_p8 = pneg %p1387_p5  ;;  %p1392_p1 = scmp.lt.s32.totalorder %s1945_s3, %s1390_s23 }
 0x382   : > { %s2098_s27 = smov (!%p750_p9, %s2076_s27), 0  ;;  %p1393_p2 = scmp.lt.s32.totalorder %s1391_s19, %s1385_s4 }
 0x383   : > { %s959_s22 = sshll.u32 %s2098_s27, 8 }
 0x384   : > { %s1950_s24 = scalar_lea.hbm %s2077_s21, %s959_s22  ;;  %p1394_p0 = por %p1393_p2, %p1392_p1 }
 0x386   : > { %p1395_p4 = pnand %p1394_p0, %p1388_p8 }
 0x388   : > { %1398 = shalt.err (!%p1395_p4)
}
 0x389   : > { %s1399_s30 = scalar_lea.hbm %s1950_s24, 256  ;;  %s1403_s27 = scalar_lea.hbm %s2077_s21, 512 }
 0x38a   : > { %p1400_p10 = scmp.ne.s32.totalorder %s1950_s24, %s1399_s30  ;;  %p1404_p12 = scmp.lt.u32.totalorder %s1950_s24, %s2077_s21 }
 0x38b   : > { %p1405_p6 = scmp.lt.u32.totalorder %s1403_s27, %s1399_s30  ;;  %p1407_p13 = scmp.lt.u32.totalorder %s1399_s30, %s1950_s24 }
 0x38c   : > { %p1401_p3 = pnand %p1400_p10, %p2078_p7 }
 0x38d   : > { %p1406_p9 = por %p1405_p6, %p1404_p12 }
 0x38e   : > { %p1402_p11 = pneg %p1401_p3 }
 0x38f   : > { %p1408_p5 = por %p1407_p13, %p1406_p9 }
 0x391   : > { %p1409_p8 = pnand %p1408_p5, %p1402_p11 }
 0x393   : > { %1412 = shalt.err (!%p1409_p8)
}
 0x394   : > { %s1536_s7 = smov 128   ;;  %s1537_s4 = smov 8  }
 0x395   : > { %1026 = dma.vmem_to_hbm [thread:$0]  (%p2078_p7), %s1945_s3, 256, %s1950_s24, %s1954_s1, %s1536_s7, %s1536_s7, %s1537_s4  }
 0x396 PF: > { %s2079_s16 = sld [smem:[#allocation30_spill]]  ;;  %p1068_p1 = scmp.ge.s32.totalorder %s1519_s11, 2 }
 0x397   : > { %p2080_p2 = scmp.ne.s32.totalorder %s2061_s18, 0 }
 0x399   : > { %p1052_p0 = pnand %p1068_p1, %p2080_p2 }
 0x39c   : > { %s773_s23 = sand.u32 1, %s2079_s16  }
 0x39d   : > { %s774_s19 = scalar_lea.sflag [#allocation14], %s773_s23 }
 0x39e   : > { %1474 = dma.done.wait (!%p1052_p0), %s774_s19, 256  }
 0x39f   : > { %1476 = vsyncadd (!%p1052_p0), %s774_s19, 4294967040  ;;  %s26_s11 = sadd.s32 1, %s1519_s11   ;;  %s2081_s24 = smov %s1483_s25 }
 0x3a0   : > { %p23_p4 = scmp.ge.s32.totalorder %s26_s11, 8   ;;  %s2082_s25 = smov %s1487_s26 }
 0x3a1   : > { %s2083_s26 = smov %s1845_s0  ;;  %s2084_s27 = smov %s1495_s28 }
 0x3a2   : > { %s2085_s28 = smov %s1499_s29  ;;  %s2086_s29 = smov %s1833_s15 }
 0x3a3   : > { %s2087_s30 = smov %s1511_s9  ;;  %s2088_s8 = smov %s1515_s10 }
 0x3a4   : > { %s2089_s9 = smov %s2092_s20  ;;  %s2090_s10 = smov %s2096_s17 }
 0x3a5   :  { %25 = sbr.rel (!%p23_p4) target bundleno = 19 (0x13), region = 145 }
 0x3ac   :  { %779 = vsyncpa [#allocation13], 1 }
 0x3ad   :  { %781 = vsyncpa [#allocation13 + $0x1], 1 }
 0x3ae   :  { %782 = vsyncpa [#allocation16], 1 }
 0x3af   :  { %783 = vsyncpa [#allocation19], 1 }
 0x3b0   :  { %784 = vsyncpa [#allocation22], 1 }
 0x3b1   :  { %785 = vsyncpa [#allocation14], 1 }
 0x3b2   :  { %787 = vsyncpa [#allocation14 + $0x1], 1 }

</bundles_post_ra>
